<compile_context>
chip_gen: v7x
topology: tpu7x:2x2x1
jax: 0.10.0
libtpu: 0.0.40
codegen_flags: <defaults>
</compile_context>

<pallas_src>
import functools
import math

import jax
import jax.numpy as jnp
from jax.experimental import pallas as pl
from jax.experimental.pallas import tpu as pltpu


# ----------------------------------------------------------------------------
# Pallas kernel: `step` fused GNN cells for one batch block of TB elements.
# ----------------------------------------------------------------------------
def _gnn_kernel(a_ref, h_ref, w_ref, b_ref, out_ref, *, step, Hp):
    TB, S, _ = h_ref.shape
    G = 3 * Hp                       # one gate-group (r|i|n), lane-aligned
    mm_dtype = w_ref.dtype           # bf16 or f32 matmul operands

    A = a_ref[...].astype(mm_dtype)              # (TB, S, 2S)
    W = w_ref[...]                                # (Hp, 9Hp)
    b_all = b_ref[...]                            # (1, 12Hp) f32
    bias_big = b_all[:, : 3 * G]                  # (1, 9Hp)  rides the h-matmul
    gi_bias = b_all[:, 3 * G:]                    # (1, 3Hp)  constant gi bias

    h = h_ref[...].astype(jnp.float32)            # (TB, S, Hp)

    # `step` is a small static int -> unrolled; hidden stays resident in VMEM.
    for _ in range(step):
        # ONE big weight matmul on the flattened (TB*S, Hp) view.
        h2 = h.reshape(TB * S, Hp).astype(mm_dtype)
        big = jnp.dot(h2, W, preferred_element_type=jnp.float32) + bias_big
        big = big.reshape(TB, S, 3 * G)           # (TB, S, 9Hp)

        m_in = big[..., :G]                       # A_in-side messages  (f32)
        m_out = big[..., G:2 * G]                 # A_out-side messages (f32)
        gh = big[..., 2 * G:]                     # hidden gate preacts (f32)

        # ONE batched A @ [m_in; m_out] matmul (no A_in/A_out lane slicing).
        m_cat = jnp.concatenate([m_in, m_out], axis=1).astype(mm_dtype)  # (TB,2S,3Hp)
        gi = jnp.einsum("bij,bjh->bih", A, m_cat,
                        preferred_element_type=jnp.float32) + gi_bias    # (TB,S,3Hp)

        # GRU gate math in f32; every slice is at a 128-lane boundary.
        i_r, i_i, i_n = gi[..., :Hp], gi[..., Hp:2 * Hp], gi[..., 2 * Hp:]
        h_r, h_i, h_n = gh[..., :Hp], gh[..., Hp:2 * Hp], gh[..., 2 * Hp:]
        resetgate = jax.nn.sigmoid(i_r + h_r)
        inputgate = jax.nn.sigmoid(i_i + h_i)
        newgate = jnp.tanh(i_n + resetgate * h_n)
        h = newgate + inputgate * (h - newgate)

    out_ref[...] = h.astype(out_ref.dtype)


# ----------------------------------------------------------------------------
# Offline weight fusion (done once in the wrapper, folded by jit).
# ----------------------------------------------------------------------------
def _fuse_gnn_params(p, Hp):
    H = p["w_hh"].shape[1]
    W_ih_in_t = p["w_ih"][:, :H].T                # (H, 3H)  acts on input_in
    W_ih_out_t = p["w_ih"][:, H:].T               # (H, 3H)  acts on input_out

    W_in = p["w_ein"].T @ W_ih_in_t               # (H, 3H)
    W_out = p["w_eout"].T @ W_ih_out_t            # (H, 3H)
    W_hh = p["w_hh"].T                            # (H, 3H)

    b_in = p["b_ein"] @ W_ih_in_t                 # (3H,)
    b_out = p["b_eout"] @ W_ih_out_t              # (3H,)
    b_hh = p["b_hh"]                              # (3H,)
    gi_b = p["b_iah"] @ W_ih_in_t + p["b_oah"] @ W_ih_out_t + p["b_ih"]   # (3H,)

    # Pad so gate g occupies lanes [g*Hp, g*Hp + H); pad rows/cols/biases are 0,
    # which keeps the padded hidden lanes exactly zero across steps.
    def pad_w(w):                                 # (H, 3H) -> (Hp, 3Hp)
        w3 = w.reshape(H, 3, H)
        out = jnp.zeros((Hp, 3, Hp), w.dtype).at[:H, :, :H].set(w3)
        return out.reshape(Hp, 3 * Hp)

    def pad_b(b):                                 # (3H,) -> (3Hp,)
        b3 = b.reshape(3, H)
        out = jnp.zeros((3, Hp), b.dtype).at[:, :H].set(b3)
        return out.reshape(3 * Hp)

    W_big = jnp.concatenate([pad_w(W_in), pad_w(W_out), pad_w(W_hh)], axis=1)
    bias_all = jnp.concatenate(
        [pad_b(b_in), pad_b(b_out), pad_b(b_hh), pad_b(gi_b)])[None, :]   # (1,12Hp)
    return W_big, bias_all


# ----------------------------------------------------------------------------
# GNN.forward wrapper.
# ----------------------------------------------------------------------------
@functools.partial(jax.jit, static_argnames=("step", "block_b", "use_bf16"))
def gnn_forward(A, hidden, params, *, step=1, block_b=8, use_bf16=True):
    B, S, H = hidden.shape
    assert A.shape == (B, S, 2 * S)

    Hp = ((H + 127) // 128) * 128                 # lane-pad hidden/gates to 128
    W_big, bias_all = _fuse_gnn_params(params, Hp)

    mm_dtype = jnp.bfloat16 if use_bf16 else jnp.float32
    TB = min(block_b, B)
    Bp = pl.cdiv(B, TB) * TB                      # batch padded to TB multiple

    h_pad = jnp.zeros((Bp, S, Hp), jnp.float32).at[:B, :, :H].set(
        hidden.astype(jnp.float32))
    A_pad = jnp.zeros((Bp, S, 2 * S), mm_dtype).at[:B].set(A.astype(mm_dtype))
    W_big = W_big.astype(mm_dtype)
    bias_all = bias_all.astype(jnp.float32)

    out = pl.pallas_call(
        functools.partial(_gnn_kernel, step=step, Hp=Hp),
        out_shape=jax.ShapeDtypeStruct((Bp, S, Hp), jnp.float32),
        grid=(Bp // TB,),
        in_specs=[
            pl.BlockSpec((TB, S, 2 * S), lambda b: (b, 0, 0)),   # A block
            pl.BlockSpec((TB, S, Hp), lambda b: (b, 0, 0)),      # hidden block
            pl.BlockSpec((Hp, 9 * Hp), lambda b: (0, 0)),        # fused weights
            pl.BlockSpec((1, 12 * Hp), lambda b: (0, 0)),        # fused biases
        ],
        out_specs=pl.BlockSpec((TB, S, Hp), lambda b: (b, 0, 0)),
        compiler_params=pltpu.CompilerParams(
            dimension_semantics=("parallel",)),
    )(A_pad, h_pad, W_big, bias_all)

    return out[:B, :, :H].astype(hidden.dtype)


# ----------------------------------------------------------------------------
# Pure-JAX reference (mirrors the PyTorch GNNCell exactly), for verification.
# ----------------------------------------------------------------------------
def _gnn_cell_ref(A, hidden, p):
    S = A.shape[1]
    h_in = hidden @ p["w_ein"].T + p["b_ein"]
    h_out = hidden @ p["w_eout"].T + p["b_eout"]
    input_in = jnp.einsum("bij,bjh->bih", A[:, :, :S], h_in) + p["b_iah"]
    input_out = jnp.einsum("bij,bjh->bih", A[:, :, S:], h_out) + p["b_oah"]
    inputs = jnp.concatenate([input_in, input_out], axis=2)
    gi = inputs @ p["w_ih"].T + p["b_ih"]
    gh = hidden @ p["w_hh"].T + p["b_hh"]
    i_r, i_i, i_n = jnp.split(gi, 3, axis=2)
    h_r, h_i, h_n = jnp.split(gh, 3, axis=2)
    r = jax.nn.sigmoid(i_r + h_r)
    z = jax.nn.sigmoid(i_i + h_i)
    n = jnp.tanh(i_n + r * h_n)
    return n + z * (hidden - n)


def gnn_forward_ref(A, hidden, params, step):
    for _ in range(step):
        hidden = _gnn_cell_ref(A, hidden, params)
    return hidden


# ----------------------------------------------------------------------------
# Deterministic parameter init (PyTorch reset_parameters: U(-1/sqrt(H), 1/sqrt(H))).
# ----------------------------------------------------------------------------
def init_params(key, H):
    stdv = 1.0 / math.sqrt(H)
    ks = jax.random.split(key, 10)
    u = lambda k, shape: jax.random.uniform(k, shape, jnp.float32, -stdv, stdv)
    return {
        "w_ih": u(ks[0], (3 * H, 2 * H)),
        "w_hh": u(ks[1], (3 * H, H)),
        "b_ih": u(ks[2], (3 * H,)),
        "b_hh": u(ks[3], (3 * H,)),
        "b_iah": u(ks[4], (H,)),
        "b_oah": u(ks[5], (H,)),
        "w_ein": u(ks[6], (H, H)),
        "b_ein": u(ks[7], (H,)),
        "w_eout": u(ks[8], (H, H)),
        "b_eout": u(ks[9], (H,)),
    }


if __name__ == "__main__":
    B, S, H = 6, 8, 32
    step = 2

    key = jax.random.PRNGKey(0)
    k_par, k_h, k_a = jax.random.split(key, 3)

    params = init_params(k_par, H)
    stdv = 1.0 / math.sqrt(H)
    hidden = jax.random.uniform(k_h, (B, S, H), jnp.float32, -stdv, stdv)
    A_raw = jax.random.uniform(k_a, (B, S, 2 * S), jnp.float32)
    A = A_raw / jnp.maximum(jnp.sum(A_raw, axis=-1, keepdims=True), 1e-6)

    ref = gnn_forward_ref(A, hidden, params, step)

    # f32 matmul path: bit-for-bit-ish against the reference.
    out_f32 = jax.block_until_ready(
        gnn_forward(A, hidden, params, step=step, block_b=4, use_bf16=False))
    assert out_f32.shape == (B, S, H)
    assert jnp.allclose(out_f32, ref, rtol=1e-5, atol=1e-5), "f32 mismatch vs reference"

    # bf16 MXU-operand path (default for v5e/v6e/v7x): relaxed tolerance.
    out_bf16 = jax.block_until_ready(
        gnn_forward(A, hidden, params, step=step, block_b=4, use_bf16=True))
    assert jnp.allclose(out_bf16, ref, rtol=2e-2, atol=2e-2), "bf16 mismatch vs reference"

    print("KERNEL_OK")
</pallas_src>

<mosaic_0001>
module attributes {stable_mosaic.version = 11 : i64} {
  func.func @_gnn_kernel(%arg0: i32, %arg1: memref<4x8x16xf32, #tpu.memory_space<vmem>>, %arg2: memref<4x8x128xf32, #tpu.memory_space<vmem>>, %arg3: memref<128x1152xf32, #tpu.memory_space<vmem>>, %arg4: memref<1x1536xf32, #tpu.memory_space<vmem>>, %arg5: memref<4x8x128xf32, #tpu.memory_space<vmem>>) attributes {dimension_semantics = [#tpu.dimension_semantics<parallel>], iteration_bounds = array<i64: 2>, scalar_prefetch = 0 : i64, scratch_operands = 0 : i64, tpu.core_type = #tpu.core_type<tc>, window_params = [{transform_indices = @transform_0, window_bounds = array<i64: 4, 8, 16>}, {transform_indices = @transform_1, window_bounds = array<i64: 4, 8, 128>}, {pipeline_mode = #tpu.pipeline_mode<synchronous>, transform_indices = @transform_2, window_bounds = array<i64: 128, 1152>}, {pipeline_mode = #tpu.pipeline_mode<synchronous>, transform_indices = @transform_3, window_bounds = array<i64: 1, 1536>}, {transform_indices = @transform_4, window_bounds = array<i64: 4, 8, 128>}]} {
    %c0 = arith.constant 0 : index
    %c0_0 = arith.constant 0 : index
    %c0_1 = arith.constant 0 : index
    %0 = vector.load %arg1[%c0, %c0_0, %c0_1] : memref<4x8x16xf32, #tpu.memory_space<vmem>>, vector<4x8x16xf32>
    %c0_2 = arith.constant 0 : index
    %c0_3 = arith.constant 0 : index
    %1 = vector.load %arg3[%c0_2, %c0_3] : memref<128x1152xf32, #tpu.memory_space<vmem>>, vector<128x1152xf32>
    %c0_4 = arith.constant 0 : index
    %c0_5 = arith.constant 0 : index
    %2 = vector.load %arg4[%c0_4, %c0_5] : memref<1x1536xf32, #tpu.memory_space<vmem>>, vector<1x1536xf32>
    %3 = vector.extract_strided_slice %2 {offsets = [0, 0], sizes = [1, 1152], strides = [1, 1]} : vector<1x1536xf32> to vector<1x1152xf32>
    %4 = vector.extract_strided_slice %2 {offsets = [0, 1152], sizes = [1, 384], strides = [1, 1]} : vector<1x1536xf32> to vector<1x384xf32>
    %c0_6 = arith.constant 0 : index
    %c0_7 = arith.constant 0 : index
    %c0_8 = arith.constant 0 : index
    %5 = vector.load %arg2[%c0_6, %c0_7, %c0_8] : memref<4x8x128xf32, #tpu.memory_space<vmem>>, vector<4x8x128xf32>
    %6 = vector.shape_cast %5 : vector<4x8x128xf32> to vector<32x128xf32>
    %cst = arith.constant dense<0.000000e+00> : vector<32x1152xf32>
    %7 = tpu.matmul %6, %1, %cst {dimension_numbers = #tpu.dot_dimension_numbers<[1], [0], [0], [1], [0, 0, 1, 1], [], []>} : vector<32x128xf32>, vector<128x1152xf32>, vector<32x1152xf32> -> vector<32x1152xf32>
    %8 = vector.broadcast %3 : vector<1x1152xf32> to vector<32x1152xf32>
    %9 = arith.addf %7, %8 : vector<32x1152xf32>
    %10 = vector.shape_cast %9 : vector<32x1152xf32> to vector<4x8x1152xf32>
    %11 = vector.extract_strided_slice %10 {offsets = [0, 0, 0], sizes = [4, 8, 384], strides = [1, 1, 1]} : vector<4x8x1152xf32> to vector<4x8x384xf32>
    %12 = vector.extract_strided_slice %10 {offsets = [0, 0, 384], sizes = [4, 8, 384], strides = [1, 1, 1]} : vector<4x8x1152xf32> to vector<4x8x384xf32>
    %13 = vector.extract_strided_slice %10 {offsets = [0, 0, 768], sizes = [4, 8, 384], strides = [1, 1, 1]} : vector<4x8x1152xf32> to vector<4x8x384xf32>
    %14 = tpu.concatenate %11, %12 in 1 : vector<4x8x384xf32>, vector<4x8x384xf32> -> vector<4x16x384xf32>
    "tpu.trace_start"() <{level = 10 : i32, message = "bij,bjh->bih"}> : () -> ()
    %cst_9 = arith.constant dense<0.000000e+00> : vector<4x8x384xf32>
    %15 = tpu.matmul %0, %14, %cst_9 {dimension_numbers = #tpu.dot_dimension_numbers<[2], [1], [1], [2], [0, 0, 0, 1, 1, 2], [0], [0]>} : vector<4x8x16xf32>, vector<4x16x384xf32>, vector<4x8x384xf32> -> vector<4x8x384xf32>
    "tpu.trace_stop"() : () -> ()
    %16 = vector.shape_cast %4 : vector<1x384xf32> to vector<1x1x384xf32>
    %17 = vector.broadcast %16 : vector<1x1x384xf32> to vector<4x8x384xf32>
    %18 = arith.addf %15, %17 : vector<4x8x384xf32>
    %19 = vector.extract_strided_slice %18 {offsets = [0, 0, 0], sizes = [4, 8, 128], strides = [1, 1, 1]} : vector<4x8x384xf32> to vector<4x8x128xf32>
    %20 = vector.extract_strided_slice %18 {offsets = [0, 0, 128], sizes = [4, 8, 128], strides = [1, 1, 1]} : vector<4x8x384xf32> to vector<4x8x128xf32>
    %21 = vector.extract_strided_slice %18 {offsets = [0, 0, 256], sizes = [4, 8, 128], strides = [1, 1, 1]} : vector<4x8x384xf32> to vector<4x8x128xf32>
    %22 = vector.extract_strided_slice %13 {offsets = [0, 0, 0], sizes = [4, 8, 128], strides = [1, 1, 1]} : vector<4x8x384xf32> to vector<4x8x128xf32>
    %23 = vector.extract_strided_slice %13 {offsets = [0, 0, 128], sizes = [4, 8, 128], strides = [1, 1, 1]} : vector<4x8x384xf32> to vector<4x8x128xf32>
    %24 = vector.extract_strided_slice %13 {offsets = [0, 0, 256], sizes = [4, 8, 128], strides = [1, 1, 1]} : vector<4x8x384xf32> to vector<4x8x128xf32>
    %25 = arith.addf %19, %22 : vector<4x8x128xf32>
    %26 = arith.negf %25 : vector<4x8x128xf32>
    %27 = math.exp %26 : vector<4x8x128xf32>
    %cst_10 = arith.constant 1.000000e+00 : f32
    %28 = vector.broadcast %cst_10 : f32 to vector<4x8x128xf32>
    %29 = arith.addf %28, %27 : vector<4x8x128xf32>
    %30 = arith.divf %28, %29 : vector<4x8x128xf32>
    %31 = arith.addf %20, %23 : vector<4x8x128xf32>
    %32 = arith.negf %31 : vector<4x8x128xf32>
    %33 = math.exp %32 : vector<4x8x128xf32>
    %cst_11 = arith.constant 1.000000e+00 : f32
    %34 = vector.broadcast %cst_11 : f32 to vector<4x8x128xf32>
    %35 = arith.addf %34, %33 : vector<4x8x128xf32>
    %36 = arith.divf %34, %35 : vector<4x8x128xf32>
    %37 = arith.mulf %30, %24 : vector<4x8x128xf32>
    %38 = arith.addf %21, %37 : vector<4x8x128xf32>
    %39 = math.tanh %38 : vector<4x8x128xf32>
    %40 = arith.subf %5, %39 : vector<4x8x128xf32>
    %41 = arith.mulf %36, %40 : vector<4x8x128xf32>
    %42 = arith.addf %39, %41 : vector<4x8x128xf32>
    %43 = vector.shape_cast %42 : vector<4x8x128xf32> to vector<32x128xf32>
    %cst_12 = arith.constant dense<0.000000e+00> : vector<32x1152xf32>
    %44 = tpu.matmul %43, %1, %cst_12 {dimension_numbers = #tpu.dot_dimension_numbers<[1], [0], [0], [1], [0, 0, 1, 1], [], []>} : vector<32x128xf32>, vector<128x1152xf32>, vector<32x1152xf32> -> vector<32x1152xf32>
    %45 = vector.broadcast %3 : vector<1x1152xf32> to vector<32x1152xf32>
    %46 = arith.addf %44, %45 : vector<32x1152xf32>
    %47 = vector.shape_cast %46 : vector<32x1152xf32> to vector<4x8x1152xf32>
    %48 = vector.extract_strided_slice %47 {offsets = [0, 0, 0], sizes = [4, 8, 384], strides = [1, 1, 1]} : vector<4x8x1152xf32> to vector<4x8x384xf32>
    %49 = vector.extract_strided_slice %47 {offsets = [0, 0, 384], sizes = [4, 8, 384], strides = [1, 1, 1]} : vector<4x8x1152xf32> to vector<4x8x384xf32>
    %50 = vector.extract_strided_slice %47 {offsets = [0, 0, 768], sizes = [4, 8, 384], strides = [1, 1, 1]} : vector<4x8x1152xf32> to vector<4x8x384xf32>
    %51 = tpu.concatenate %48, %49 in 1 : vector<4x8x384xf32>, vector<4x8x384xf32> -> vector<4x16x384xf32>
    "tpu.trace_start"() <{level = 10 : i32, message = "bij,bjh->bih"}> : () -> ()
    %cst_13 = arith.constant dense<0.000000e+00> : vector<4x8x384xf32>
    %52 = tpu.matmul %0, %51, %cst_13 {dimension_numbers = #tpu.dot_dimension_numbers<[2], [1], [1], [2], [0, 0, 0, 1, 1, 2], [0], [0]>} : vector<4x8x16xf32>, vector<4x16x384xf32>, vector<4x8x384xf32> -> vector<4x8x384xf32>
    "tpu.trace_stop"() : () -> ()
    %53 = vector.shape_cast %4 : vector<1x384xf32> to vector<1x1x384xf32>
    %54 = vector.broadcast %53 : vector<1x1x384xf32> to vector<4x8x384xf32>
    %55 = arith.addf %52, %54 : vector<4x8x384xf32>
    %56 = vector.extract_strided_slice %55 {offsets = [0, 0, 0], sizes = [4, 8, 128], strides = [1, 1, 1]} : vector<4x8x384xf32> to vector<4x8x128xf32>
    %57 = vector.extract_strided_slice %55 {offsets = [0, 0, 128], sizes = [4, 8, 128], strides = [1, 1, 1]} : vector<4x8x384xf32> to vector<4x8x128xf32>
    %58 = vector.extract_strided_slice %55 {offsets = [0, 0, 256], sizes = [4, 8, 128], strides = [1, 1, 1]} : vector<4x8x384xf32> to vector<4x8x128xf32>
    %59 = vector.extract_strided_slice %50 {offsets = [0, 0, 0], sizes = [4, 8, 128], strides = [1, 1, 1]} : vector<4x8x384xf32> to vector<4x8x128xf32>
    %60 = vector.extract_strided_slice %50 {offsets = [0, 0, 128], sizes = [4, 8, 128], strides = [1, 1, 1]} : vector<4x8x384xf32> to vector<4x8x128xf32>
    %61 = vector.extract_strided_slice %50 {offsets = [0, 0, 256], sizes = [4, 8, 128], strides = [1, 1, 1]} : vector<4x8x384xf32> to vector<4x8x128xf32>
    %62 = arith.addf %56, %59 : vector<4x8x128xf32>
    %63 = arith.negf %62 : vector<4x8x128xf32>
    %64 = math.exp %63 : vector<4x8x128xf32>
    %cst_14 = arith.constant 1.000000e+00 : f32
    %65 = vector.broadcast %cst_14 : f32 to vector<4x8x128xf32>
    %66 = arith.addf %65, %64 : vector<4x8x128xf32>
    %67 = arith.divf %65, %66 : vector<4x8x128xf32>
    %68 = arith.addf %57, %60 : vector<4x8x128xf32>
    %69 = arith.negf %68 : vector<4x8x128xf32>
    %70 = math.exp %69 : vector<4x8x128xf32>
    %cst_15 = arith.constant 1.000000e+00 : f32
    %71 = vector.broadcast %cst_15 : f32 to vector<4x8x128xf32>
    %72 = arith.addf %71, %70 : vector<4x8x128xf32>
    %73 = arith.divf %71, %72 : vector<4x8x128xf32>
    %74 = arith.mulf %67, %61 : vector<4x8x128xf32>
    %75 = arith.addf %58, %74 : vector<4x8x128xf32>
    %76 = math.tanh %75 : vector<4x8x128xf32>
    %77 = arith.subf %42, %76 : vector<4x8x128xf32>
    %78 = arith.mulf %73, %77 : vector<4x8x128xf32>
    %79 = arith.addf %76, %78 : vector<4x8x128xf32>
    %c0_16 = arith.constant 0 : index
    %c0_17 = arith.constant 0 : index
    %c0_18 = arith.constant 0 : index
    %80 = vector.load %arg5[%c0_16, %c0_17, %c0_18] : memref<4x8x128xf32, #tpu.memory_space<vmem>>, vector<4x8x128xf32>
    tpu.vector_store %arg5[%c0_16, %c0_17, %c0_18], %79 {strides = array<i32>} : memref<4x8x128xf32, #tpu.memory_space<vmem>>, vector<4x8x128xf32>,
    return
  }
  func.func @transform_0(%arg0: i32) -> (i32, i32, i32) {
    %c0_i32 = arith.constant 0 : i32
    %c0_i32_0 = arith.constant 0 : i32
    %c0_i32_1 = arith.constant 0 : i32
    return %arg0, %c0_i32, %c0_i32_0 : i32, i32, i32
  }
  func.func @transform_1(%arg0: i32) -> (i32, i32, i32) {
    %c0_i32 = arith.constant 0 : i32
    %c0_i32_0 = arith.constant 0 : i32
    %c0_i32_1 = arith.constant 0 : i32
    return %arg0, %c0_i32, %c0_i32_0 : i32, i32, i32
  }
  func.func @transform_2(%arg0: i32) -> (i32, i32) {
    %c0_i32 = arith.constant 0 : i32
    %c0_i32_0 = arith.constant 0 : i32
    %c0_i32_1 = arith.constant 0 : i32
    return %c0_i32, %c0_i32_0 : i32, i32
  }
  func.func @transform_3(%arg0: i32) -> (i32, i32) {
    %c0_i32 = arith.constant 0 : i32
    %c0_i32_0 = arith.constant 0 : i32
    %c0_i32_1 = arith.constant 0 : i32
    return %c0_i32, %c0_i32_0 : i32, i32
  }
  func.func @transform_4(%arg0: i32) -> (i32, i32, i32) {
    %c0_i32 = arith.constant 0 : i32
    %c0_i32_0 = arith.constant 0 : i32
    %c0_i32_1 = arith.constant 0 : i32
    return %arg0, %c0_i32, %c0_i32_0 : i32, i32, i32
  }
}

</mosaic_0001>

<bundles_post_ra>
// kernel: gnn_forward.1
= control target key start
LH: loop header
LB: loop body
LE: loop exit
PB: predicated region body
PF: predicated region fallthrough
CT: control target
= control target key end

     0   :  { %s3487_s15 = smov 0   ;;  %s4629_s0 = inlined_call_operand.vmem [shape: f32[8,8,16], index: 0, kind: input, shape index: {}]   ;;  %s4630_s1 = inlined_call_operand.vmem [shape: f32[8,8,128], index: 1, kind: input, shape index: {}]   ;;  %s4631_s2 = inlined_call_operand.vmem [shape: f32[128,1152], index: 2, kind: input, shape index: {}]   ;;  %s4632_s3 = inlined_call_operand.vmem [shape: f32[1,1536], index: 3, kind: input, shape index: {}]   ;;  %s4633_s4 = inlined_call_operand.vmem [shape: f32[8,8,128], index: 4, kind: output, shape index: {}]  }
   0x1 LB: > { %s2695_s16 = sadd.s32 4294967295, %s3457_s15   ;;  %p2699_p0 = scmp.ge.s32.totalorder %s3457_s15, 1  ;;  %s3457_s15 = sphi %s3487_s15, %s14_s15  }
   0x2   : > { %p174_p1 = scmp.lt.s32.totalorder %s3457_s15, 3 }
   0x4   : > { %p175_p2 = pnand %p2699_p0, %p174_p1 }
   0x6   : > { %178 = sbr.rel (%p175_p2) target bundleno = 1100 (0x44c), region = 36 }
   0xd   : > { %v228_v0 = vld [vmem:[%s4631_s2 + $0x8] sm:$0xff]  ;;  %v237_v1 = vld [vmem:[%s4631_s2 + $0x50] sm:$0xff]  ;;  %v230_v2 = vld [vmem:[%s4631_s2 + $0x18] sm:$0xff]  ;;  %v4634_v7 = vmov 0.0   ;;  %s3681_s7 = sshll.u32 %s2695_s16, 2  ;;  %vm3461_vm0 = vmmov 0  }
   0xe   : > { %v3504_v3 = vpack.c.bf16 %v237_v1, %v228_v0  ;;  %v239_v4 = vld [vmem:[%s4631_s2 + $0x60] sm:$0xff]  ;;  %v236_v6 = vld [vmem:[%s4631_s2 + $0x48] sm:$0xff]  ;;  %488 = vmatprep.mubr.f32.mxu0 %v4634_v7  ;;  %577 = vmatprep.mubr.f32.mxu1 %v4634_v7  ;;  %v229_v10 = vld [vmem:[%s4631_s2 + $0x10] sm:$0xff]  ;;  %p206_p3 = scmp.lt.s32.totalorder %s3681_s7, 7  ;;  %vm881_vm1 = vcmask 130048  }
   0xf   : > { %v227_v5 = vld [vmem:[%s4631_s2] sm:$0xff]  ;;  %v3517_v8 = vpack.c.bf16 %v239_v4, %v230_v2  ;;  %v238_v11 = vld [vmem:[%s4631_s2 + $0x58] sm:$0xff]  ;;  %v248_v15 = vld [vmem:[%s4631_s2 + $0xa8] sm:$0xff] }
  0x10   : > { %v3519_v9 = vpack.c.bf16 %v236_v6, %v227_v5  ;;  %v246_v12 = vld [vmem:[%s4631_s2 + $0x98] sm:$0xff]  ;;  %2937 = vmatprep.subr.bf16.mxu0 %v3504_v3  ;;  %v3531_v13 = vpack.c.bf16 %v238_v11, %v229_v10  ;;  %v255_v14 = vld [vmem:[%s4631_s2 + $0xe0] sm:$0xff]  ;;  %v257_v16 = vld [vmem:[%s4631_s2 + $0xf0] sm:$0xff]  ;;  %s4804_s7 = smov (!%p206_p3, %s3681_s7), 7 }
  0x11   : > { %2969 = vmatprep.subr.bf16.mxu1 %v3517_v8  ;;  %v3544_v17 = vpack.c.bf16 %v255_v14, %v246_v12  ;;  %v3546_v18 = vpack.c.bf16 %v257_v16, %v248_v15  ;;  %v245_v19 = vld [vmem:[%s4631_s2 + $0x90] sm:$0xff]  ;;  %v254_v20 = vld [vmem:[%s4631_s2 + $0xd8] sm:$0xff]  ;;  %v247_v21 = vld [vmem:[%s4631_s2 + $0xa0] sm:$0xff]  ;;  %s3783_s25 = sshll.u32 %s4804_s7, 3 }
  0x12   : > { %2939 = vmatpush1.bf16.msra.mxu0 %v3519_v9  ;;  %2971 = vmatpush1.bf16.msra.mxu1 %v3531_v13  ;;  %v3558_v22 = vpack.c.bf16 %v254_v20, %v245_v19  ;;  %v256_v23 = vld [vmem:[%s4631_s2 + $0xe8] sm:$0xff]  ;;  %v273_v25 = vld [vmem:[%s4631_s2 + $0x170] sm:$0xff]  ;;  %v266_v28 = vld [vmem:[%s4631_s2 + $0x138] sm:$0xff]  ;;  %s3802_s5 = scalar_lea.vmem %s4630_s1, %s3783_s25  ;;  %s4291_s26 = scalar_lea.vmem %s4629_s0, %s3783_s25 }
  0x13   : > { %v264_v24 = vld [vmem:[%s4631_s2 + $0x128] sm:$0xff]  ;;  %2941 = vmatprep.subr.bf16.mxu0 %v3544_v17  ;;  %2973 = vmatprep.subr.bf16.mxu1 %v3546_v18  ;;  %v3571_v26 = vpack.c.bf16 %v256_v23, %v247_v21  ;;  %v275_v29 = vld [vmem:[%s4631_s2 + $0x180] sm:$0xff]  ;;  %v265_v33 = vld [vmem:[%s4631_s2 + $0x130] sm:$0xff]  ;;  %s4613_s30 = scalar_lea.vmem %s4633_s4, %s3783_s25 }
  0x14   : > { %v3573_v27 = vpack.c.bf16 %v273_v25, %v264_v24  ;;  %v263_v30 = vld [vmem:[%s4631_s2 + $0x120] sm:$0xff]  ;;  %v3584_v31 = vpack.c.bf16 %v275_v29, %v266_v28  ;;  %v272_v32 = vld [vmem:[%s4631_s2 + $0x168] sm:$0xff]  ;;  %v274_v34 = vld [vmem:[%s4631_s2 + $0x178] sm:$0xff] }
  0x15   : > { %v3596_v35 = vpack.c.bf16 %v272_v32, %v263_v30  ;;  %v282_v36 = vld [vmem:[%s4631_s2 + $0x1b8] sm:$0xff]  ;;  %v291_v37 = vld [vmem:[%s4631_s2 + $0x200] sm:$0xff]  ;;  %v284_v38 = vld [vmem:[%s4631_s2 + $0x1c8] sm:$0xff]  ;;  %v3609_v39 = vpack.c.bf16 %v274_v34, %v265_v33 }
  0x16   : > { %2943 = vmatpush1.bf16.msra.mxu0 %v3558_v22  ;;  %2975 = vmatpush1.bf16.msra.mxu1 %v3571_v26  ;;  %v3611_v40 = vpack.c.bf16 %v291_v37, %v282_v36  ;;  %v293_v41 = vld [vmem:[%s4631_s2 + $0x210] sm:$0xff]  ;;  %v290_v43 = vld [vmem:[%s4631_s2 + $0x1f8] sm:$0xff]  ;;  %v283_v45 = vld [vmem:[%s4631_s2 + $0x1c0] sm:$0xff] }
  0x17   : > { %2945 = vmatprep.subr.bf16.mxu0 %v3573_v27  ;;  %v281_v42 = vld [vmem:[%s4631_s2 + $0x1b0] sm:$0xff]  ;;  %2977 = vmatprep.subr.bf16.mxu1 %v3584_v31  ;;  %v3623_v44 = vpack.c.bf16 %v293_v41, %v284_v38  ;;  %v292_v46 = vld [vmem:[%s4631_s2 + $0x208] sm:$0xff]  ;;  %v302_v49 = vld [vmem:[%s4631_s2 + $0x258] sm:$0xff] }
  0x18   : > { %v300_v47 = vld [vmem:[%s4631_s2 + $0x248] sm:$0xff]  ;;  %v309_v48 = vld [vmem:[%s4631_s2 + $0x290] sm:$0xff]  ;;  %v311_v50 = vld [vmem:[%s4631_s2 + $0x2a0] sm:$0xff]  ;;  %v3644_v51 = vpack.c.bf16 %v290_v43, %v281_v42  ;;  %v3648_v52 = vpack.c.bf16 %v292_v46, %v283_v45 }
  0x19   : > { %v3650_v53 = vpack.c.bf16 %v309_v48, %v300_v47  ;;  %v299_v54 = vld [vmem:[%s4631_s2 + $0x240] sm:$0xff]  ;;  %v308_v55 = vld [vmem:[%s4631_s2 + $0x288] sm:$0xff]  ;;  %v301_v56 = vld [vmem:[%s4631_s2 + $0x250] sm:$0xff]  ;;  %v3662_v57 = vpack.c.bf16 %v311_v50, %v302_v49 }
  0x1a   : > { %2947 = vmatpush1.bf16.msra.mxu0 %v3596_v35  ;;  %2979 = vmatpush1.bf16.msra.mxu1 %v3609_v39  ;;  %v310_v58 = vld [vmem:[%s4631_s2 + $0x298] sm:$0xff]  ;;  %v327_v60 = vld [vmem:[%s4631_s2 + $0x320] sm:$0xff]  ;;  %v320_v61 = vld [vmem:[%s4631_s2 + $0x2e8] sm:$0xff]  ;;  %v3684_v63 = vpack.c.bf16 %v308_v55, %v299_v54 }
  0x1b   : > { %2949 = vmatprep.subr.bf16.mxu0 %v3611_v40  ;;  %2981 = vmatprep.subr.bf16.mxu1 %v3623_v44  ;;  %v318_v59 = vld [vmem:[%s4631_s2 + $0x2d8] sm:$0xff]  ;;  %v329_v62 = vld [vmem:[%s4631_s2 + $0x330] sm:$0xff]  ;;  %v3688_v0 = vpack.c.bf16 %v310_v58, %v301_v56  ;;  %v319_v5 = vld [vmem:[%s4631_s2 + $0x2e0] sm:$0xff] }
  0x1c   : > { %v3690_v1 = vpack.c.bf16 %v327_v60, %v318_v59  ;;  %v317_v2 = vld [vmem:[%s4631_s2 + $0x2d0] sm:$0xff]  ;;  %v326_v4 = vld [vmem:[%s4631_s2 + $0x318] sm:$0xff]  ;;  %v3702_v6 = vpack.c.bf16 %v329_v62, %v320_v61  ;;  %v328_v10 = vld [vmem:[%s4631_s2 + $0x328] sm:$0xff] }
  0x1d   : > { %v336_v11 = vld [vmem:[%s4631_s2 + $0x368] sm:$0xff]  ;;  %v345_v12 = vld [vmem:[%s4631_s2 + $0x3b0] sm:$0xff]  ;;  %v338_v14 = vld [vmem:[%s4631_s2 + $0x378] sm:$0xff]  ;;  %v3721_v16 = vpack.c.bf16 %v326_v4, %v317_v2  ;;  %v3725_v19 = vpack.c.bf16 %v328_v10, %v319_v5 }
  0x1e   : > { %2951 = vmatpush1.bf16.msra.mxu0 %v3644_v51  ;;  %2983 = vmatpush1.bf16.msra.mxu1 %v3648_v52  ;;  %v347_v15 = vld [vmem:[%s4631_s2 + $0x3c0] sm:$0xff]  ;;  %v3727_v20 = vpack.c.bf16 %v345_v12, %v336_v11  ;;  %v344_v23 = vld [vmem:[%s4631_s2 + $0x3a8] sm:$0xff]  ;;  %v337_v24 = vld [vmem:[%s4631_s2 + $0x370] sm:$0xff] }
  0x1f   : > { %2953 = vmatprep.subr.bf16.mxu0 %v3650_v53  ;;  %2985 = vmatprep.subr.bf16.mxu1 %v3662_v57  ;;  %v335_v21 = vld [vmem:[%s4631_s2 + $0x360] sm:$0xff]  ;;  %v3739_v25 = vpack.c.bf16 %v347_v15, %v338_v14  ;;  %v346_v28 = vld [vmem:[%s4631_s2 + $0x3b8] sm:$0xff]  ;;  %v356_v32 = vld [vmem:[%s4631_s2 + $0x408] sm:$0xff] }
  0x20   : > { %v354_v29 = vld [vmem:[%s4631_s2 + $0x3f8] sm:$0xff]  ;;  %v363_v30 = vld [vmem:[%s4631_s2 + $0x440] sm:$0xff]  ;;  %v365_v33 = vld [vmem:[%s4631_s2 + $0x450] sm:$0xff]  ;;  %v3760_v34 = vpack.c.bf16 %v344_v23, %v335_v21  ;;  %v3764_v36 = vpack.c.bf16 %v346_v28, %v337_v24 }
  0x21   : > { %v3766_v37 = vpack.c.bf16 %v363_v30, %v354_v29  ;;  %v353_v38 = vld [vmem:[%s4631_s2 + $0x3f0] sm:$0xff]  ;;  %v362_v41 = vld [vmem:[%s4631_s2 + $0x438] sm:$0xff]  ;;  %v355_v42 = vld [vmem:[%s4631_s2 + $0x400] sm:$0xff]  ;;  %v3778_v43 = vpack.c.bf16 %v365_v33, %v356_v32 }
  0x22   : > { %2955 = vmatpush1.bf16.msra.mxu0 %v3684_v63  ;;  %2987 = vmatpush1.bf16.msra.mxu1 %v3688_v0  ;;  %v364_v45 = vld [vmem:[%s4631_s2 + $0x448] sm:$0xff]  ;;  %v241_v47 = vld [vmem:[%s4631_s2 + $0x70] sm:$0xff]  ;;  %v3792_v48 = vpack.c.bf16 %v362_v41, %v353_v38  ;;  %v231_v54 = vld [vmem:[%s4631_s2 + $0x20] sm:$0xff] }
  0x23   : > { %2957 = vmatprep.subr.bf16.mxu0 %v3690_v1  ;;  %2989 = vmatprep.subr.bf16.mxu1 %v3702_v6  ;;  %v232_v46 = vld [vmem:[%s4631_s2 + $0x28] sm:$0xff]  ;;  %v3796_v49 = vpack.c.bf16 %v364_v45, %v355_v42  ;;  %v250_v56 = vld [vmem:[%s4631_s2 + $0xb8] sm:$0xff]  ;;  %v259_v58 = vld [vmem:[%s4631_s2 + $0x100] sm:$0xff] }
  0x24   : > { %v3804_v50 = vpack.c.bf16 %v241_v47, %v232_v46  ;;  %v240_v55 = vld [vmem:[%s4631_s2 + $0x68] sm:$0xff]  ;;  %v3821_v59 = vld [vmem:[%s3802_s5] sm:$0xff]  ;;  %v249_v61 = vld [vmem:[%s4631_s2 + $0xb0] sm:$0xff]  ;;  %v3833_v2 = vpack.c.bf16 %v259_v58, %v250_v56 }
  0x25   : > { %4701 = vst [vmem:[#allocation2_spill] sm:$0xff] %v3821_v59  ;;  %v3823_v60 = vpack.c.bf16 %v240_v55, %v231_v54  ;;  %v258_v62 = vld [vmem:[%s4631_s2 + $0xf8] sm:$0xff]  ;;  %v268_v4 = vld [vmem:[%s4631_s2 + $0x148] sm:$0xff]  ;;  %v243_v10 = vld [vmem:[%s4631_s2 + $0x80] sm:$0xff] }
  0x26   : > { %2959 = vmatpush1.bf16.msra.mxu0 %v3721_v16  ;;  %2991 = vmatpush1.bf16.msra.mxu1 %v3725_v19  ;;  %4703 = vst [vmem:[#allocation4_spill] sm:$0xff] %v3833_v2  ;;  %v234_v5 = vld [vmem:[%s4631_s2 + $0x38] sm:$0xff]  ;;  %v277_v11 = vld [vmem:[%s4631_s2 + $0x190] sm:$0xff]  ;;  %v252_v23 = vld [vmem:[%s4631_s2 + $0xc8] sm:$0xff]  ;;  %v3866_v28 = vpack.c.bf16 %v258_v62, %v249_v61 }
  0x27   : > { %2961 = vmatprep.subr.bf16.mxu0 %v3727_v20  ;;  %2993 = vmatprep.subr.bf16.mxu1 %v3739_v25  ;;  %4702 = vst [vmem:[#allocation3_spill] sm:$0xff] %v3823_v60  ;;  %v3847_v12 = vpack.c.bf16 %v243_v10, %v234_v5  ;;  %v233_v14 = vld [vmem:[%s4631_s2 + $0x30] sm:$0xff]  ;;  %v242_v15 = vld [vmem:[%s4631_s2 + $0x78] sm:$0xff]  ;;  %v3869_v29 = vld [vmem:[%s3802_s5 + $0x8] sm:$0xff]  ;;  %v3878_v33 = vpack.c.bf16 %v277_v11, %v268_v4 }
  0x28   : > { %v3856_v21 = vpack.c.bf16 %v242_v15, %v233_v14  ;;  %v261_v24 = vld [vmem:[%s4631_s2 + $0x110] sm:$0xff]  ;;  %4706 = vst [vmem:[#allocation7_spill] sm:$0xff] %v3866_v28  ;;  %4707 = vst [vmem:[#allocation8_spill] sm:$0xff] %v3869_v29  ;;  %v251_v30 = vld [vmem:[%s4631_s2 + $0xc0] sm:$0xff] }
  0x29   : > { %4704 = vst [vmem:[#allocation5_spill] sm:$0xff] %v3847_v12  ;;  %v260_v32 = vld [vmem:[%s4631_s2 + $0x108] sm:$0xff]  ;;  %4708 = vst [vmem:[#allocation9_spill] sm:$0xff] %v3878_v33  ;;  %v267_v38 = vld [vmem:[%s4631_s2 + $0x140] sm:$0xff]  ;;  %v3895_v46 = vpack.c.bf16 %v261_v24, %v252_v23 }
  0x2a   : > { %2963 = vmatpush1.bf16.msra.mxu0 %v3760_v34  ;;  %2995 = vmatpush1.bf16.msra.mxu1 %v3764_v36  ;;  %4705 = vst [vmem:[#allocation6_spill] sm:$0xff] %v3856_v21  ;;  %v276_v41 = vld [vmem:[%s4631_s2 + $0x188] sm:$0xff]  ;;  %v286_v42 = vld [vmem:[%s4631_s2 + $0x1d8] sm:$0xff]  ;;  %v295_v45 = vld [vmem:[%s4631_s2 + $0x220] sm:$0xff]  ;;  %v3899_v47 = vpack.c.bf16 %v260_v32, %v251_v30 }
  0x2b   : > { %2965 = vmatprep.subr.bf16.mxu0 %v3766_v37  ;;  %2997 = vmatprep.subr.bf16.mxu1 %v3778_v43  ;;  %4709 = vst [vmem:[#allocation10_spill] sm:$0xff] %v3895_v46  ;;  %v3902_v54 = vpack.c.bf16 %v276_v41, %v267_v38  ;;  %v3906_v55 = vld [vmem:[%s3802_s5 + $0x10] sm:$0xff]  ;;  %v3909_v56 = vpack.c.bf16 %v295_v45, %v286_v42  ;;  %v294_v61 = vld [vmem:[%s4631_s2 + $0x218] sm:$0xff]  ;;  %v304_v62 = vld [vmem:[%s4631_s2 + $0x268] sm:$0xff] }
  0x2c   : > { %4710 = vst [vmem:[#allocation11_spill] sm:$0xff] %v3899_v47  ;;  %4712 = vst [vmem:[#allocation13_spill] sm:$0xff] %v3906_v55  ;;  %v285_v58 = vld [vmem:[%s4631_s2 + $0x1d0] sm:$0xff]  ;;  %v3933_v10 = vld [vmem:[%s3802_s5 + $0x18] sm:$0xff] }
  0x2d   : > { %4711 = vst [vmem:[#allocation12_spill] sm:$0xff] %v3902_v54  ;;  %4713 = vst [vmem:[#allocation14_spill] sm:$0xff] %v3909_v56  ;;  %v313_v4 = vld [vmem:[%s4631_s2 + $0x2b0] sm:$0xff]  ;;  %v3929_v5 = vpack.c.bf16 %v294_v61, %v285_v58  ;;  %v303_v14 = vld [vmem:[%s4631_s2 + $0x260] sm:$0xff] }
  0x2e   : > { %2967 = vmatpush1.bf16.msra.mxu0 %v3792_v48  ;;  %2999 = vmatpush1.bf16.msra.mxu1 %v3796_v49  ;;  %4715 = vst [vmem:[#allocation16_spill] sm:$0xff] %v3933_v10  ;;  %v3936_v11 = vpack.c.bf16 %v313_v4, %v304_v62  ;;  %v312_v15 = vld [vmem:[%s4631_s2 + $0x2a8] sm:$0xff]  ;;  %v322_v23 = vld [vmem:[%s4631_s2 + $0x2f8] sm:$0xff]  ;;  %v331_v24 = vld [vmem:[%s4631_s2 + $0x340] sm:$0xff] }
  0x2f   : > { %3001 = vmatprep.subr.bf16.mxu0 %v3804_v50  ;;  %3033 = vmatprep.subr.bf16.mxu1 %v3847_v12  ;;  %4714 = vst [vmem:[#allocation15_spill] sm:$0xff] %v3929_v5  ;;  %v3954_v30 = vpack.c.bf16 %v312_v15, %v303_v14  ;;  %v3958_v32 = vpack.c.bf16 %v331_v24, %v322_v23  ;;  %v321_v38 = vld [vmem:[%s4631_s2 + $0x2f0] sm:$0xff]  ;;  %v330_v41 = vld [vmem:[%s4631_s2 + $0x338] sm:$0xff]  ;;  %v340_v42 = vld [vmem:[%s4631_s2 + $0x388] sm:$0xff] }
  0x30   : > { %4716 = vst [vmem:[#allocation17_spill] sm:$0xff] %v3936_v11  ;;  %v349_v45 = vld [vmem:[%s4631_s2 + $0x3d0] sm:$0xff]  ;;  %v3975_v58 = vpack.c.bf16 %v330_v41, %v321_v38  ;;  %v339_v62 = vld [vmem:[%s4631_s2 + $0x380] sm:$0xff]  ;;  %v348_v4 = vld [vmem:[%s4631_s2 + $0x3c8] sm:$0xff] }
  0x31   : > { %489 = vmatmul.mubr.f32.vlgmr.msra.gmra.mrb[0].mxu0 %v3821_v59  ;;  %578 = vmatmul.mubr.f32.vlgmr.msra.gmra.mrb[0].mxu1 %v3821_v59  ;;  %4717 = vst [vmem:[#allocation18_spill] sm:$0xff] %v3954_v30  ;;  %4718 = vst [vmem:[#allocation19_spill] sm:$0xff] %v3958_v32  ;;  %v3978_v61 = vpack.c.bf16 %v349_v45, %v340_v42  ;;  %v358_v14 = vld [vmem:[%s4631_s2 + $0x418] sm:$0xff]  ;;  %v367_v15 = vld [vmem:[%s4631_s2 + $0x460] sm:$0xff]  ;;  %v3993_v23 = vpack.c.bf16 %v348_v4, %v339_v62 }
  0x32   : > { %3003 = vmatpush1.bf16.msra.mxu0 %v3823_v60  ;;  %494 = vmatprep.mubr.f32.mxu0 %v4634_v7  ;;  %4719 = vst [vmem:[#allocation20_spill] sm:$0xff] %v3975_v58  ;;  %v3996_v24 = vpack.c.bf16 %v367_v15, %v358_v14  ;;  %v357_v38 = vld [vmem:[%s4631_s2 + $0x410] sm:$0xff]  ;;  %v366_v41 = vld [vmem:[%s4631_s2 + $0x458] sm:$0xff]  ;;  %v279_v62 = vld [vmem:[%s4631_s2 + $0x1a0] sm:$0xff] }
  0x33   : > { %3005 = vmatprep.subr.bf16.mxu0 %v3833_v2  ;;  %583 = vmatprep.mubr.f32.mxu1 %v4634_v7  ;;  %4720 = vst [vmem:[#allocation21_spill] sm:$0xff] %v3978_v61  ;;  %4721 = vst [vmem:[#allocation22_spill] sm:$0xff] %v3993_v23  ;;  %v4005_v42 = vpack.c.bf16 %v366_v41, %v357_v38  ;;  %v270_v45 = vld [vmem:[%s4631_s2 + $0x158] sm:$0xff]  ;;  %v269_v14 = vld [vmem:[%s4631_s2 + $0x150] sm:$0xff] }
  0x34   : > { %3035 = vmatpush1.bf16.msra.mxu1 %v3856_v21  ;;  %4722 = vst [vmem:[#allocation23_spill] sm:$0xff] %v3996_v24  ;;  %v4023_v4 = vpack.c.bf16 %v279_v62, %v270_v45  ;;  %v278_v15 = vld [vmem:[%s4631_s2 + $0x198] sm:$0xff]  ;;  %v288_v41 = vld [vmem:[%s4631_s2 + $0x1e8] sm:$0xff]  ;;  %v297_v45 = vld [vmem:[%s4631_s2 + $0x230] sm:$0xff] }
  0x35   : > { %495 = vmatmul.mubr.f32.gmra.mrb[2].mxu0 %v3869_v29  ;;  %584 = vmatmul.mubr.f32.gmra.mrb[2].mxu1 %v3869_v29  ;;  %4723 = vst [vmem:[#allocation24_spill] sm:$0xff] %v4005_v42  ;;  %v4031_v38 = vpack.c.bf16 %v278_v15, %v269_v14  ;;  %v4041_v62 = vpack.c.bf16 %v297_v45, %v288_v41  ;;  %v296_v14 = vld [vmem:[%s4631_s2 + $0x228] sm:$0xff]  ;;  %v305_v41 = vld [vmem:[%s4631_s2 + $0x270] sm:$0xff] }
  0x36   : > { %3007 = vmatpush1.bf16.msra.mxu0 %v3866_v28  ;;  %500 = vmatprep.mubr.f32.mxu0 %v4634_v7  ;;  %4724 = vst [vmem:[#allocation25_spill] sm:$0xff] %v4023_v4 }
  0x37   : > { %3009 = vmatprep.subr.bf16.mxu0 %v3878_v33  ;;  %589 = vmatprep.mubr.f32.mxu1 %v4634_v7  ;;  %4725 = vst [vmem:[#allocation26_spill] sm:$0xff] %v4031_v38  ;;  %4726 = vst [vmem:[#allocation27_spill] sm:$0xff] %v4041_v62 }
  0x38   : > { %3037 = vmatprep.subr.bf16.mxu1 %v3895_v46 }
  0x39   : > { %501 = vmatmul.mubr.f32.gmra.mrb[4].mxu0 %v3906_v55  ;;  %3039 = vmatpush1.bf16.msra.mxu1 %v3899_v47 }
  0x3a   : > { %3011 = vmatpush1.bf16.msra.mxu0 %v3902_v54  ;;  %590 = vmatmul.mubr.f32.gmra.mrb[4].mxu1 %v3906_v55 }
  0x3b   : > { %3013 = vmatprep.subr.bf16.mxu0 %v3909_v56  ;;  %506 = vmatprep.mubr.f32.mxu0 %v4634_v7 }
  0x3c   : > { %595 = vmatprep.mubr.f32.mxu1 %v4634_v7  ;;  %3041 = vmatprep.subr.bf16.mxu1 %v4023_v4 }
  0x3d   : > { %507 = vmatmul.mubr.f32.gmra.mrb[6].mxu0 %v3933_v10  ;;  %3043 = vmatpush1.bf16.msra.mxu1 %v4031_v38 }
  0x3e   : > { %3015 = vmatpush1.bf16.msra.mxu0 %v3929_v5  ;;  %596 = vmatmul.mubr.f32.gmra.mrb[6].mxu1 %v3933_v10 }
  0x3f   : > { %3017 = vmatprep.subr.bf16.mxu0 %v3936_v11  ;;  %666 = vmatprep.mubr.f32.mxu0 %v4634_v7 }
  0x40   : > { %755 = vmatprep.mubr.f32.mxu1 %v4634_v7  ;;  %3045 = vmatprep.subr.bf16.mxu1 %v4041_v62 }
  0x42   : > { %3019 = vmatpush1.bf16.msra.mxu0 %v3954_v30  ;;  %v350_v30 = vld [vmem:[%s4631_s2 + $0x3d8] sm:$0xff] }
  0x43   : > { %3021 = vmatprep.subr.bf16.mxu0 %v3958_v32  ;;  %v342_v32 = vld [vmem:[%s4631_s2 + $0x398] sm:$0xff] }
  0x46   : > { %3023 = vmatpush1.bf16.msra.mxu0 %v3975_v58  ;;  %v332_v58 = vld [vmem:[%s4631_s2 + $0x348] sm:$0xff] }
  0x47   : > { %3025 = vmatprep.subr.bf16.mxu0 %v3978_v61 }
  0x4a   : > { %3027 = vmatpush1.bf16.msra.mxu0 %v3993_v23  ;;  %v333_v23 = vld [vmem:[%s4631_s2 + $0x350] sm:$0xff] }
  0x4b   : > { %3029 = vmatprep.subr.bf16.mxu0 %v3996_v24  ;;  %v315_v24 = vld [vmem:[%s4631_s2 + $0x2c0] sm:$0xff] }
  0x4e   : > { %3031 = vmatpush1.bf16.msra.mxu0 %v4005_v42  ;;  %v306_v42 = vld [vmem:[%s4631_s2 + $0x278] sm:$0xff] }
  0x4f   : > { %v4061_v45 = vpack.c.bf16 %v315_v24, %v306_v42  ;;  %v323_v42 = vld [vmem:[%s4631_s2 + $0x300] sm:$0xff] }
  0x51   : > { %667 = vmatmul.mubr.f32.vlgmr.msra.gmra.mrb[8].mxu0 %v3821_v59  ;;  %4728 = vst [vmem:[#allocation29_spill] sm:$0xff] %v4061_v45 }
  0x52   : > { %672 = vmatprep.mubr.f32.mxu0 %v4634_v7 }
  0x55   : > { %673 = vmatmul.mubr.f32.gmra.mrb[10].mxu0 %v3869_v29 }
  0x56   : > { %678 = vmatprep.mubr.f32.mxu0 %v4634_v7 }
  0x59   : > { %679 = vmatmul.mubr.f32.gmra.mrb[12].mxu0 %v3906_v55 }
  0x5a   : > { %684 = vmatprep.mubr.f32.mxu0 %v4634_v7  ;;  %v287_v7 = vld [vmem:[%s4631_s2 + $0x1e0] sm:$0xff] }
  0x5b   : > { %v4049_v15 = vpack.c.bf16 %v296_v14, %v287_v7  ;;  %v314_v7 = vld [vmem:[%s4631_s2 + $0x2b8] sm:$0xff]  ;;  %v324_v14 = vld [vmem:[%s4631_s2 + $0x308] sm:$0xff] }
  0x5c   : > { %v4073_v61 = vpack.c.bf16 %v314_v7, %v305_v41  ;;  %v4076_v24 = vpack.c.bf16 %v333_v23, %v324_v14  ;;  %v351_v41 = vld [vmem:[%s4631_s2 + $0x3e0] sm:$0xff]  ;;  %v4091_v23 = vpack.c.bf16 %v332_v58, %v323_v42  ;;  %v341_v14 = vld [vmem:[%s4631_s2 + $0x390] sm:$0xff] }
  0x5d   : > { %685 = vmatmul.mubr.f32.gmra.mrb[14].mxu0 %v3933_v10  ;;  %4727 = vst [vmem:[#allocation28_spill] sm:$0xff] %v4049_v15  ;;  %3047 = vmatpush1.bf16.msra.mxu1 %v4049_v15  ;;  %v4094_v7 = vpack.c.bf16 %v351_v41, %v342_v32  ;;  %v369_v58 = vld [vmem:[%s4631_s2 + $0x470] sm:$0xff]  ;;  %v4109_v32 = vpack.c.bf16 %v350_v30, %v341_v14  ;;  %v359_v41 = vld [vmem:[%s4631_s2 + $0x420] sm:$0xff]  ;;  %v244_v30 = vld [vmem:[%s4631_s2 + $0x88] sm:$0xff] }
  0x5e   : > { %2836 = vmatprep.mubr.f32.mxu0 %v3821_v59  ;;  %4729 = vst [vmem:[#allocation30_spill] sm:$0xff] %v4073_v61  ;;  %3049 = vmatprep.subr.bf16.mxu1 %v4061_v45  ;;  %4730 = vst [vmem:[#allocation31_spill] sm:$0xff] %v4076_v24  ;;  %v360_v45 = vld [vmem:[%s4631_s2 + $0x428] sm:$0xff] }
  0x5f   : > { %4731 = vst [vmem:[#allocation32_spill] sm:$0xff] %v4091_v23  ;;  %4732 = vst [vmem:[#allocation33_spill] sm:$0xff] %v4094_v7  ;;  %v4112_v42 = vpack.c.bf16 %v369_v58, %v360_v45  ;;  %v4737_v58 = vmov 0.0  }
  0x60   : > { %4733 = vst [vmem:[#allocation34_spill] sm:$0xff] %v4109_v32 }
  0x61   : > { %3051 = vmatpush1.bf16.msra.mxu1 %v4073_v61  ;;  %4734 = vst [vmem:[#allocation35_spill] sm:$0xff] %v4112_v42  ;;  %v235_v61 = vld [vmem:[%s4631_s2 + $0x40] sm:$0xff] }
  0x62   : > { %3053 = vmatprep.subr.bf16.mxu1 %v4076_v24  ;;  %v368_v24 = vld [vmem:[%s4631_s2 + $0x468] sm:$0xff]  ;;  %v4126_v14 = vpack.c.bf16 %v244_v30, %v235_v61  ;;  %v253_v61 = vld [vmem:[%s4631_s2 + $0xd0] sm:$0xff]  ;;  %v271_v30 = vld [vmem:[%s4631_s2 + $0x160] sm:$0xff] }
  0x63   : > { %v4129_v45 = vpack.c.bf16 %v368_v24, %v359_v41  ;;  %v262_v24 = vld [vmem:[%s4631_s2 + $0x118] sm:$0xff] }
  0x64   : > { %4735 = vst [vmem:[#allocation36_spill] sm:$0xff] %v4126_v14  ;;  %3065 = vmatprep.subr.bf16.mxu0 %v4126_v14  ;;  %v4146_v41 = vpack.c.bf16 %v262_v24, %v253_v61  ;;  %v289_v61 = vld [vmem:[%s4631_s2 + $0x1f0] sm:$0xff]  ;;  %v298_v24 = vld [vmem:[%s4631_s2 + $0x238] sm:$0xff] }
  0x65   : > { %3055 = vmatpush1.bf16.msra.mxu1 %v4091_v23  ;;  %4736 = vst [vmem:[#allocation37_spill] sm:$0xff] %v4129_v45  ;;  %3067 = vmatpush3.bf16.msra.mxu0 %v4126_v14  ;;  %v280_v14 = vld [vmem:[%s4631_s2 + $0x1a8] sm:$0xff] }
  0x66   : > { %3057 = vmatprep.subr.bf16.mxu1 %v4094_v7  ;;  %4738 = vst [vmem:[#allocation38_spill] sm:$0xff] %v4146_v41  ;;  %3069 = vmatprep.subr.bf16.mxu0 %v4146_v41 }
  0x69   : > { %3059 = vmatpush1.bf16.msra.mxu1 %v4109_v32  ;;  %3071 = vmatpush3.bf16.msra.mxu0 %v4146_v41  ;;  %v4169_v41 = vpack.c.bf16 %v298_v24, %v289_v61  ;;  %v325_v61 = vld [vmem:[%s4631_s2 + $0x310] sm:$0xff]  ;;  %v334_v24 = vld [vmem:[%s4631_s2 + $0x358] sm:$0xff] }
  0x6a   : > { %3061 = vmatprep.subr.bf16.mxu1 %v4112_v42 }
  0x6b   : > { %4740 = vst [vmem:[#allocation40_spill] sm:$0xff] %v4169_v41 }
  0x6d   : > { %3063 = vmatpush1.bf16.msra.mxu1 %v4129_v45  ;;  %v4158_v45 = vpack.c.bf16 %v280_v14, %v271_v30  ;;  %v307_v14 = vld [vmem:[%s4631_s2 + $0x280] sm:$0xff]  ;;  %v316_v30 = vld [vmem:[%s4631_s2 + $0x2c8] sm:$0xff] }
  0x6f   : > { %4739 = vst [vmem:[#allocation39_spill] sm:$0xff] %v4158_v45  ;;  %3073 = vmatprep.subr.bf16.mxu0 %v4158_v45 }
  0x70   : > { %756 = vmatmul.mubr.f32.vlgmr.msra.gmra.mrb[8].mxu1 %v3821_v59  ;;  %3075 = vmatpush3.bf16.msra.mxu0 %v4158_v45  ;;  %v4179_v45 = vpack.c.bf16 %v316_v30, %v307_v14  ;;  %v343_v14 = vld [vmem:[%s4631_s2 + $0x3a0] sm:$0xff]  ;;  %v352_v30 = vld [vmem:[%s4631_s2 + $0x3e8] sm:$0xff] }
  0x71   : > { %761 = vmatprep.mubr.f32.mxu1 %v4737_v58  ;;  %3077 = vmatprep.subr.bf16.mxu0 %v4169_v41 }
  0x72   : > { %4741 = vst [vmem:[#allocation41_spill] sm:$0xff] %v4179_v45 }
  0x74   : > { %762 = vmatmul.mubr.f32.gmra.mrb[10].mxu1 %v3869_v29  ;;  %3079 = vmatpush3.bf16.msra.mxu0 %v4169_v41  ;;  %v4189_v41 = vpack.c.bf16 %v334_v24, %v325_v61  ;;  %v361_v61 = vld [vmem:[%s4631_s2 + $0x430] sm:$0xff]  ;;  %v370_v24 = vld [vmem:[%s4631_s2 + $0x478] sm:$0xff] }
  0x75   : > { %767 = vmatprep.mubr.f32.mxu1 %v4737_v58  ;;  %3081 = vmatprep.subr.bf16.mxu0 %v4179_v45 }
  0x76   : > { %4742 = vst [vmem:[#allocation42_spill] sm:$0xff] %v4189_v41 }
  0x78   : > { %768 = vmatmul.mubr.f32.gmra.mrb[12].mxu1 %v3906_v55  ;;  %3083 = vmatpush3.bf16.msra.mxu0 %v4179_v45  ;;  %v4199_v45 = vpack.c.bf16 %v352_v30, %v343_v14  ;;  %v4659_v14 = vmov 0.0|0.0   ;;  %v379_v30 = vlaneseq }
  0x79   : > { %773 = vmatprep.mubr.f32.mxu1 %v4737_v58  ;;  %3085 = vmatprep.subr.bf16.mxu0 %v4189_v41 }
  0x7a   : > { %4743 = vst [vmem:[#allocation43_spill] sm:$0xff] %v4199_v45 }
  0x7c   : > { %774 = vmatmul.mubr.f32.gmra.mrb[14].mxu1 %v3933_v10  ;;  %3087 = vmatpush3.bf16.msra.mxu0 %v4189_v41  ;;  %v4209_v41 = vpack.c.bf16 %v370_v24, %v361_v61  ;;  %v4219_v61 = vshrl.u32 %v379_v30, 7 }
  0x7d   : > { %949 = vmatprep.mubr.f32.mxu1 %v4737_v58  ;;  %3089 = vmatprep.subr.bf16.mxu0 %v4199_v45 }
  0x7e   : > { %4744 = vst [vmem:[#allocation44_spill] sm:$0xff] %v4209_v41  ;;  %4745 = vst [vmem:[#allocation45_spill] sm:$0xff] %v4219_v61  ;;  %v4222_v24 = vsub.s32 0, %v4219_v61 }
  0x80   : > { %3091 = vmatpush3.bf16.msra.mxu0 %v4199_v45  ;;  %4746 = vst [vmem:[#allocation46_spill] sm:$0xff] %v4222_v24 }
  0x81   : > { %3093 = vmatprep.subr.bf16.mxu0 %v4209_v41 }
  0x84   : > { %3095 = vmatpush3.bf16.msra.mxu0 %v4209_v41  ;;  %v393_v41 = vsub.s32 3, %v4219_v61 }
  0x85   : > { %3121 = vmatprep.subr.bf16.mxu0 %v4659_v14  ;;  %v4227_v14 = vld [vmem:[%s4632_s3] sm:$0xff] }
  0x86   : > { %4747 = vst [vmem:[#allocation47_spill] sm:$0xff] %v4227_v14  ;;  %v4232_v45 = vrot.slane %v4227_v14, %v4222_v24  ;;  %v4235_v42 = vrot.slane %v4227_v14, %v393_v41 }
  0x87   : > { %2837 = vmatmul.mubr.f32.vlgmr.msra.gmra.mrb[16].mxu0 %v3869_v29  ;;  %v397_v29 = vsub.s32 4, %v4219_v61 }
  0x88   : > { %2839 = vmatprep.mubr.f32.mxu0 %v3906_v55  ;;  %4748 = vst [vmem:[#allocation48_spill] sm:$0xff] %v4232_v45  ;;  %4749 = vst [vmem:[#allocation49_spill] sm:$0xff] %v4235_v42 }
  0x8b   : > { %2840 = vmatmul.mubr.f32.gmra.mrb[18].mxu0 %v3933_v10 }
  0x8c   : > { %2867 = vmatprep.mubr.msk.f32.mxu0 %vm3461_vm0, %v4737_v58 }
 0x104   : > { %v490_v32 = vpop.f32.mrb[0].mxu0  ;;  %v579_v7 = vpop.f32.mrb[0].mxu1 }
 0x105   : > { %v491_v30 = vadd.f32 %v490_v32, %v4232_v45  ;;  %v492_v23 = vpop.f32.mrb[1].mxu0  ;;  %v581_v10 = vpop.f32.mrb[1].mxu1 }
 0x106   : > { %v582_v11 = vadd.f32 %v581_v10, %v4235_v42 }
 0x108   : > { %v496_v15 = vpop.f32.mrb[2].mxu0  ;;  %v3098_v5 = vpack.c.bf16 %v582_v11, %v491_v30  ;;  %v585_v56 = vpop.f32.mrb[2].mxu1  ;;  %v401_v30 = vsub.s32 5, %v4219_v61 }
 0x109   : > { %v4240_v62 = vadd.f32 %v496_v15, %v4232_v45  ;;  %v498_v55 = vpop.f32.mrb[3].mxu0  ;;  %v587_v38 = vpop.f32.mrb[3].mxu1 }
 0x10a   : > { %v4243_v54 = vadd.f32 %v587_v38, %v4235_v42 }
 0x10c   : > { %v502_v41 = vpop.f32.mrb[4].mxu0  ;;  %v3105_v32 = vpack.c.bf16 %v4243_v54, %v4240_v62  ;;  %v4278_v62 = vrot.slane %v4227_v14, %v397_v29 }
 0x10d   : > { %v4248_v4 = vadd.f32 %v502_v41, %v4232_v45  ;;  %v591_v33 = vpop.f32.mrb[4].mxu1  ;;  %v504_v10 = vpop.f32.mrb[5].mxu0  ;;  %v4697_v41 = vsub.s32 1, %v4219_v61 }
 0x10e   : > { %v593_v47 = vpop.f32.mrb[5].mxu1 }
 0x10f   : > { %v4251_v11 = vadd.f32 %v593_v47, %v4235_v42  ;;  %v4692_v47 = vsub.s32 2, %v4219_v61 }
 0x110   : > { %v508_v15 = vpop.f32.mrb[6].mxu0 }
 0x111   : > { %v4256_v38 = vadd.f32 %v508_v15, %v4232_v45  ;;  %v597_v28 = vpop.f32.mrb[6].mxu1  ;;  %v510_v46 = vpop.f32.mrb[7].mxu0  ;;  %v4270_v15 = vrot.slane %v4227_v14, %v4692_v47 }
 0x112   : > { %v599_v2 = vpop.f32.mrb[7].mxu1 }
 0x113   : > { %v4259_v54 = vadd.f32 %v599_v2, %v4235_v42  ;;  %v4275_v2 = vrot.slane %v4227_v14, %v4697_v41  ;;  %v4281_v42 = vrot.slane %v4227_v14, %v401_v30  ;;  %v580_v45 = vadd.f32 %v579_v7, %v4270_v15 }
 0x114   : > { %v586_v29 = vadd.f32 %v585_v56, %v4270_v15  ;;  %v4750_v14 = vmov 0.0|0.0   ;;  %v592_v12 = vadd.f32 %v591_v33, %v4270_v15  ;;  %v598_v33 = vadd.f32 %v597_v28, %v4270_v15 }
 0x115   : > { %v493_v60 = vadd.f32 %v492_v23, %v4275_v2  ;;  %v499_v7 = vadd.f32 %v498_v55, %v4275_v2 }
 0x124   : > { %v668_v21 = vpop.f32.mrb[8].mxu0 }
 0x125   : > { %v669_v59 = vadd.f32 %v668_v21, %v4278_v62  ;;  %v670_v47 = vpop.f32.mrb[9].mxu0 }
 0x126   : > { %v671_v24 = vadd.f32 %v670_v47, %v4281_v42 }
 0x127   : > { %v3096_v61 = vpack.c.bf16 %v669_v59, %v493_v60  ;;  %v4298_v59 = vld [vmem:[%s4291_s26] sm:$0xff] }
 0x128   : > { %v3101_v30 = vpack.c.bf16 %v671_v24, %v580_v45  ;;  %v674_v41 = vpop.f32.mrb[10].mxu0  ;;  %v505_v24 = vadd.f32 %v504_v10, %v4275_v2  ;;  %v511_v10 = vadd.f32 %v510_v46, %v4275_v2  ;;  %v4751_v46 = vpack.c.bf16 %v4251_v11, %v4248_v4 }
 0x129   : > { %v675_v23 = vadd.f32 %v674_v41, %v4278_v62  ;;  %3097 = vmatprep.subr.bf16.mxu1 %v3096_v61  ;;  %v676_v21 = vpop.f32.mrb[11].mxu0 }
 0x12a   : > { %3099 = vmatpush1.bf16.msra.mxu1 %v3098_v5  ;;  %v677_v47 = vadd.f32 %v676_v21, %v4281_v42 }
 0x12b   : > { %v3103_v60 = vpack.c.bf16 %v675_v23, %v499_v7  ;;  %3100 = vmatprep.subr.bf16.mxu1 %v4750_v14 }
 0x12c   : > { %v3108_v56 = vpack.c.bf16 %v677_v47, %v586_v29  ;;  %v680_v45 = vpop.f32.mrb[12].mxu0 }
 0x12d   : > { %v681_v55 = vadd.f32 %v680_v45, %v4278_v62  ;;  %2706 = vmatmul.mubr.msk.f32.vlgmr.msra.gmra.mrb[8].mxu1 %vm881_vm1, %v4298_v59  ;;  %v682_v5 = vpop.f32.mrb[13].mxu0 }
 0x12e   : > { %3102 = vmatpush3.bf16.msra.mxu1 %v3101_v30  ;;  %v683_v61 = vadd.f32 %v682_v5, %v4281_v42  ;;  %2846 = vmatprep.mubr.msk.f32.mxu1 %vm3461_vm0, %v4737_v58  ;;  %v4316_v30 = vld [vmem:[%s4291_s26 + $0x8] sm:$0xff] }
 0x12f   : > { %v3110_v41 = vpack.c.bf16 %v681_v55, %v505_v24  ;;  %3104 = vmatprep.subr.bf16.mxu1 %v3103_v60  ;;  %v4335_v60 = vld [vmem:[%s4291_s26 + $0x18] sm:$0xff] }
 0x130   : > { %v3115_v29 = vpack.c.bf16 %v683_v61, %v592_v12  ;;  %v686_v7 = vpop.f32.mrb[14].mxu0 }
 0x131   : > { %v687_v23 = vadd.f32 %v686_v7, %v4278_v62  ;;  %2847 = vmatmul.mubr.msk.f32.vlgmr.msra.gmra.mrb[16].mxu1 %vm881_vm1, %v4298_v59  ;;  %v688_v21 = vpop.f32.mrb[15].mxu0 }
 0x132   : > { %3106 = vmatpush1.bf16.msra.mxu1 %v3105_v32  ;;  %1093 = vmatprep.mubr.f32.mxu1 %v4737_v58  ;;  %v689_v47 = vadd.f32 %v688_v21, %v4281_v42  ;;  %v4332_v32 = vld [vmem:[%s4291_s26 + $0x10] sm:$0xff] }
 0x133   : > { %v3117_v28 = vpack.c.bf16 %v687_v23, %v511_v10  ;;  %3107 = vmatprep.subr.bf16.mxu1 %v4750_v14 }
 0x134   : > { %v3122_v12 = vpack.c.bf16 %v689_v47, %v598_v33 }
 0x135   : > { %2708 = vmatmul.mubr.msk.f32.vlgmr.msra.gmra.mrb[10].mxu1 %vm881_vm1, %v4316_v30 }
 0x136   : > { %3109 = vmatpush3.bf16.msra.mxu1 %v3108_v56  ;;  %2853 = vmatprep.mubr.msk.f32.mxu1 %vm3461_vm0, %v4737_v58 }
 0x137   : > { %3111 = vmatprep.subr.bf16.mxu1 %v3110_v41  ;;  %3123 = vmatpush3.bf16.msra.mxu0 %v3122_v12 }
 0x138   : > { %3125 = vmatprep.subr.bf16.mxu0 %v3504_v3  ;;  %v4752_v3 = vpack.c.bf16 %v4259_v54, %v4256_v38 }
 0x139   : > { %2854 = vmatmul.mubr.msk.f32.vlgmr.msra.gmra.mrb[18].mxu1 %vm881_vm1, %v4316_v30 }
 0x13a   : > { %3113 = vmatpush1.bf16.msra.mxu1 %v4751_v46  ;;  %1237 = vmatprep.mubr.f32.mxu1 %v4737_v58 }
 0x13b   : > { %3114 = vmatprep.subr.bf16.mxu1 %v4750_v14  ;;  %2868 = vmatmul.mubr.msk.f32.vlgmr.msra.gmra.mrb[20].mxu0 %vm881_vm1, %v4335_v60 }
 0x13c   : > { %3127 = vmatpush1.bf16.msra.mxu0 %v3519_v9  ;;  %1602 = vmatprep.mubr.f32.mxu0 %v4737_v58 }
 0x13d   : > { %2710 = vmatmul.mubr.msk.f32.vlgmr.msra.gmra.mrb[12].mxu1 %vm881_vm1, %v4332_v32  ;;  %3129 = vmatprep.subr.bf16.mxu0 %v3544_v17 }
 0x13e   : > { %3116 = vmatpush3.bf16.msra.mxu1 %v3115_v29  ;;  %2860 = vmatprep.mubr.msk.f32.mxu1 %vm3461_vm0, %v4737_v58 }
 0x13f   : > { %3118 = vmatprep.subr.bf16.mxu1 %v3117_v28 }
 0x140   : > { %3131 = vmatpush1.bf16.msra.mxu0 %v3558_v22  ;;  %v372_v22 = vld [vmem:[%s4632_s3 + $0x8] sm:$0xf] }
 0x141   : > { %2861 = vmatmul.mubr.msk.f32.vlgmr.msra.gmra.mrb[20].mxu1 %vm881_vm1, %v4332_v32  ;;  %3133 = vmatprep.subr.bf16.mxu0 %v3573_v27 }
 0x142   : > { %3120 = vmatpush1.bf16.msra.mxu1 %v4752_v3  ;;  %1381 = vmatprep.mubr.f32.mxu1 %v4737_v58 }
 0x143   : > { %3157 = vmatprep.subr.bf16.mxu1 %v3517_v8  ;;  %v4753_v8 = vld [vmem:[#allocation5_spill] sm:$0xff] }
 0x144   : > { %3135 = vmatpush1.bf16.msra.mxu0 %v3596_v35  ;;  %v4755_v35 = vld [vmem:[#allocation47_spill] sm:$0xff] }
 0x145   : > { %2712 = vmatmul.mubr.msk.f32.vlgmr.msra.gmra.mrb[14].mxu1 %vm881_vm1, %v4335_v60  ;;  %3137 = vmatprep.subr.bf16.mxu0 %v3611_v40  ;;  %v4756_v40 = vld [vmem:[#allocation46_spill] sm:$0xff] }
 0x146   : > { %3159 = vmatpush1.bf16.msra.mxu1 %v3531_v13  ;;  %1691 = vmatprep.mubr.f32.mxu1 %v4737_v58  ;;  %v4415_v7 = vrot.slane %v372_v22, %v4756_v40 }
 0x147   : > { %3161 = vmatprep.subr.bf16.mxu1 %v3546_v18 }
 0x148   : > { %3139 = vmatpush1.bf16.msra.mxu0 %v3644_v51 }
 0x149   : > { %3141 = vmatprep.subr.bf16.mxu0 %v3650_v53 }
 0x14a   : > { %3163 = vmatpush1.bf16.msra.mxu1 %v3571_v26  ;;  %v4754_v26 = vld [vmem:[#allocation45_spill] sm:$0xff] }
 0x14b   : > { %3165 = vmatprep.subr.bf16.mxu1 %v3584_v31  ;;  %v405_v27 = vsub.s32 6, %v4754_v26  ;;  %v865_v31 = vrot.slane %v372_v22, 1  ;;  %v4758_v28 = vsub.s32 2, %v4754_v26 }
 0x14c   : > { %3143 = vmatpush1.bf16.msra.mxu0 %v3684_v63 }
 0x14d   : > { %3145 = vmatprep.subr.bf16.mxu0 %v3690_v1  ;;  %v4420_v12 = vrot.slane %v865_v31, %v4758_v28  ;;  %v4764_v28 = vld [vmem:[#allocation10_spill] sm:$0xff] }
 0x14e   : > { %3167 = vmatpush1.bf16.msra.mxu1 %v3609_v39  ;;  %v406_v39 = vrot.slane %v4755_v35, %v405_v27 }
 0x14f   : > { %3169 = vmatprep.subr.bf16.mxu1 %v3623_v44  ;;  %v869_v44 = vrot.slane %v865_v31, %v4756_v40 }
 0x150   : > { %3147 = vmatpush1.bf16.msra.mxu0 %v3721_v16 }
 0x151   : > { %3149 = vmatprep.subr.bf16.mxu0 %v3727_v20  ;;  %v4399_v51 = vadd.f32 %v869_v44, %v406_v39 }
 0x152   : > { %3171 = vmatpush1.bf16.msra.mxu1 %v3648_v52  ;;  %v409_v52 = vsub.s32 7, %v4754_v26 }
 0x153   : > { %3173 = vmatprep.subr.bf16.mxu1 %v3662_v57 }
 0x154   : > { %3151 = vmatpush1.bf16.msra.mxu0 %v3760_v34  ;;  %v410_v63 = vrot.slane %v4755_v35, %v409_v52 }
 0x155   : > { %3153 = vmatprep.subr.bf16.mxu0 %v3766_v37 }
 0x156   : > { %3175 = vmatpush1.bf16.msra.mxu1 %v3688_v0  ;;  %v4757_v0 = vsub.s32 1, %v4754_v26 }
 0x157   : > { %3177 = vmatprep.subr.bf16.mxu1 %v3702_v6 }
 0x158   : > { %3155 = vmatpush1.bf16.msra.mxu0 %v3792_v48  ;;  %v873_v1 = vrot.slane %v865_v31, %v4757_v0 }
 0x159   : > { %3189 = vmatprep.subr.bf16.mxu0 %v3804_v50 }
 0x15a   : > { %3179 = vmatpush1.bf16.msra.mxu1 %v3725_v19  ;;  %v4387_v9 = vpop.f32.mrb[16].mxu0  ;;  %v4406_v20 = vadd.f32 %v873_v1, %v410_v63 }
 0x15b   : > { %3181 = vmatprep.subr.bf16.mxu1 %v3739_v25  ;;  %v846_v13 = vpop.f32.mrb[17].mxu0  ;;  %v852_v63 = vadd.f32 %v4387_v9, %v4415_v7  ;;  %v4759_v9 = vld [vmem:[#allocation2_spill] sm:$0xff] }
 0x15c   : > { %v847_v3 = vadd.f32 %v846_v13, %v4415_v7 }
 0x15e   : > { %3183 = vmatpush1.bf16.msra.mxu1 %v3764_v36  ;;  %v4389_v17 = vpop.f32.mrb[18].mxu0 }
 0x15f   : > { %3185 = vmatprep.subr.bf16.mxu1 %v3778_v43  ;;  %v4391_v18 = vpop.f32.mrb[19].mxu0 }
 0x162   : > { %3187 = vmatpush1.bf16.msra.mxu1 %v3796_v49 }
 0x163   : > { %3221 = vmatprep.subr.bf16.mxu1 %v4753_v8 }
 0x200   : > { %v951_v53 = vpop.f32.mrb[8].mxu1 }
 0x201   : > { %v3313_v57 = vadd.f32 %v4399_v51, %v951_v53  ;;  %v953_v6 = vpop.f32.mrb[9].mxu1 }
 0x202   : > { %v3315_v36 = vadd.f32 %v4406_v20, %v953_v6 }
 0x203   : > { %v2714_v16 = vmul.f32 -1.442695, %v3313_v57 }
 0x204   : > { %v1022_v19 = vpop.f32.mrb[16].mxu1  ;;  %v2718_v50 = vmul.f32 -1.442695, %v3315_v36 }
 0x205   : > { %3371 = vpow2.f32 %v2714_v16  ;;  %v2848_v25 = vpop.f32.mrb[17].mxu1  ;;  %v1023_v40 = vadd.f32 %v1022_v19, %v4420_v12 }
 0x208   : > { %v1095_v34 = vpop.f32.mrb[10].mxu1 }
 0x209   : > { %v3317_v37 = vadd.f32 %v4399_v51, %v1095_v34  ;;  %v1097_v43 = vpop.f32.mrb[11].mxu1 }
 0x20a   : > { %v3319_v24 = vadd.f32 %v4406_v20, %v1097_v43 }
 0x20b   : > { %v2715_v48 = vmul.f32 -1.442695, %v3317_v37  ;;  %v857_v37 = vadd.f32 %v4391_v18, %v4415_v7 }
 0x20c   : > { %v1166_v49 = vpop.f32.mrb[18].mxu1  ;;  %v2719_v33 = vmul.f32 -1.442695, %v3319_v24 }
 0x20d   : > { %3373 = vpow2.f32 %v2715_v48  ;;  %v2855_v4 = vpop.f32.mrb[19].mxu1  ;;  %v1167_v6 = vadd.f32 %v1166_v49, %v4420_v12 }
 0x20e   : > { %v4410_v11 = vpop.f32.mrb[20].mxu0  ;;  %3375 = vpow2.f32 %v2718_v50 }
 0x20f   : > { %v3372_v38 = vpop.eup %3371  ;;  %v2869_v54 = vpop.f32.mrb[21].mxu0 }
 0x210   : > { %v1474_v56 = vadd.f32 1.0, %v3372_v38  ;;  %v1239_v45 = vpop.f32.mrb[12].mxu1 }
 0x211   : > { %v3321_v55 = vadd.f32 %v4399_v51, %v1239_v45  ;;  %v1241_v5 = vpop.f32.mrb[13].mxu1 }
 0x212   : > { %3377 = vrcp.f32 %v1474_v56  ;;  %v3323_v21 = vadd.f32 %v4406_v20, %v1241_v5 }
 0x213   : > { %v2716_v61 = vmul.f32 -1.442695, %v3321_v55 }
 0x214   : > { %v1310_v41 = vpop.f32.mrb[20].mxu1  ;;  %v2720_v39 = vmul.f32 -1.442695, %v3323_v21 }
 0x215   : > { %3379 = vpow2.f32 %v2716_v61  ;;  %v2862_v29 = vpop.f32.mrb[21].mxu1  ;;  %v1311_v49 = vadd.f32 %v1310_v41, %v4420_v12  ;;  %v862_v61 = vadd.f32 %v4389_v17, %v4415_v7  ;;  %v4761_v41 = vld [vmem:[#allocation6_spill] sm:$0xff] }
 0x216   : > { %3381 = vpow2.f32 %v2719_v33  ;;  %v4760_v33 = vld [vmem:[#allocation3_spill] sm:$0xff]  ;;  %v1455_v29 = vadd.f32 %v4410_v11, %v4420_v12 }
 0x217   : > { %v3374_v10 = vpop.eup %3373 }
 0x218   : > { %v1475_v23 = vadd.f32 1.0, %v3374_v10  ;;  %v1383_v47 = vpop.f32.mrb[14].mxu1  ;;  %v3376_v27 = vpop.eup %3375 }
 0x219   : > { %v3325_v46 = vadd.f32 %v4399_v51, %v1383_v47  ;;  %v1385_v8 = vpop.f32.mrb[15].mxu1  ;;  %v1502_v53 = vadd.f32 1.0, %v3376_v27  ;;  %v4763_v47 = vld [vmem:[#allocation4_spill] sm:$0xff] }
 0x21a   : > { %3383 = vrcp.f32 %v1475_v23  ;;  %v3327_v57 = vadd.f32 %v4406_v20, %v1385_v8  ;;  %v4762_v23 = vld [vmem:[#allocation8_spill] sm:$0xff] }
 0x21b   : > { %v2717_v35 = vmul.f32 -1.442695, %v3325_v46 }
 0x21c   : > { %v3378_v22 = vpop.eup %3377  ;;  %v2721_v1 = vmul.f32 -1.442695, %v3327_v57  ;;  %v4772_v57 = vld [vmem:[#allocation14_spill] sm:$0xff] }
 0x21d   : > { %3385 = vpow2.f32 %v2717_v35  ;;  %v1514_v44 = vmul.f32 %v3378_v22, %v847_v3  ;;  %v4765_v35 = vld [vmem:[#allocation7_spill] sm:$0xff] }
 0x21e   : > { %3387 = vpow2.f32 %v2720_v39  ;;  %v4766_v22 = vld [vmem:[#allocation11_spill] sm:$0xff]  ;;  %v4767_v39 = vld [vmem:[#allocation9_spill] sm:$0xff] }
 0x21f   : > { %v3380_v52 = vpop.eup %3379  ;;  %v1518_v26 = vadd.f32 %v1514_v44, %v1023_v40  ;;  %v4768_v40 = vld [vmem:[#allocation25_spill] sm:$0xff] }
 0x220   : > { %v1476_v31 = vadd.f32 1.0, %v3380_v52  ;;  %v3382_v13 = vpop.eup %3381  ;;  %v4769_v52 = vld [vmem:[#allocation12_spill] sm:$0xff] }
 0x221   : > { %3389 = vtanh.f32 %v1518_v26  ;;  %v1503_v25 = vadd.f32 1.0, %v3382_v13  ;;  %v4771_v26 = vld [vmem:[#allocation13_spill] sm:$0xff]  ;;  %v4773_v13 = vld [vmem:[#allocation27_spill] sm:$0xff] }
 0x222   : > { %3391 = vrcp.f32 %v1476_v31 }
 0x223   : > { %3393 = vrcp.f32 %v1502_v53  ;;  %v4770_v53 = vld [vmem:[#allocation26_spill] sm:$0xff] }
 0x224   : > { %v3384_v0 = vpop.eup %3383  ;;  %3395 = vpow2.f32 %v2721_v1  ;;  %v4774_v1 = vld [vmem:[#allocation15_spill] sm:$0xff] }
 0x225   : > { %v1515_v16 = vmul.f32 %v3384_v0, %v852_v63 }
 0x227   : > { %v3386_v19 = vpop.eup %3385  ;;  %v1519_v34 = vadd.f32 %v1515_v16, %v1167_v6  ;;  %v4775_v6 = vld [vmem:[#allocation28_spill] sm:$0xff] }
 0x228   : > { %v1477_v36 = vadd.f32 1.0, %v3386_v19  ;;  %v3388_v43 = vpop.eup %3387  ;;  %v4776_v19 = vld [vmem:[#allocation17_spill] sm:$0xff] }
 0x229   : > { %3397 = vtanh.f32 %v1519_v34  ;;  %v1504_v45 = vadd.f32 1.0, %v3388_v43  ;;  %v4780_v43 = vld [vmem:[#allocation16_spill] sm:$0xff] }
 0x22a   : > { %3399 = vrcp.f32 %v1477_v36  ;;  %v4778_v36 = vld [vmem:[#allocation18_spill] sm:$0xff] }
 0x22b   : > { %v3390_v48 = vpop.eup %3389  ;;  %3401 = vrcp.f32 %v1503_v25  ;;  %v4777_v25 = vld [vmem:[#allocation29_spill] sm:$0xff] }
 0x22c   : > { %v3392_v50 = vpop.eup %3391  ;;  %v1526_v4 = vsub.f32 %v4759_v9, %v3390_v48  ;;  %v4782_v9 = vld [vmem:[#allocation31_spill] sm:$0xff] }
 0x22d   : > { %v3394_v38 = vpop.eup %3393  ;;  %v1516_v54 = vmul.f32 %v3392_v50, %v857_v37  ;;  %v4779_v37 = vld [vmem:[#allocation30_spill] sm:$0xff]  ;;  %v4781_v50 = vld [vmem:[#allocation19_spill] sm:$0xff] }
 0x22e   : > { %v1530_v56 = vmul.f32 %v3394_v38, %v1526_v4  ;;  %v3396_v5 = vpop.eup %3395 }
 0x22f   : > { %v1520_v24 = vadd.f32 %v1516_v54, %v1311_v49  ;;  %v1505_v8 = vadd.f32 1.0, %v3396_v5  ;;  %v4783_v49 = vld [vmem:[#allocation20_spill] sm:$0xff]  ;;  %v4787_v5 = vld [vmem:[#allocation22_spill] sm:$0xff] }
 0x230   : > { %v4433_v55 = vadd.f32 %v3390_v48, %v1530_v56  ;;  %v4784_v54 = vld [vmem:[#allocation32_spill] sm:$0xff] }
 0x231   : > { %3403 = vtanh.f32 %v1520_v24  ;;  %v4786_v24 = vld [vmem:[#allocation33_spill] sm:$0xff] }
 0x232   : > { %1603 = vmatmul.mubr.f32.vlgmr.msra.gmra.mrb[22].mxu0 %v4433_v55  ;;  %1692 = vmatmul.mubr.f32.vlgmr.msra.gmra.mrb[22].mxu1 %v4433_v55  ;;  %3405 = vrcp.f32 %v1504_v45  ;;  %v4785_v45 = vld [vmem:[#allocation21_spill] sm:$0xff] }
 0x233   : > { %v3398_v18 = vpop.eup %3397  ;;  %3191 = vmatpush1.bf16.msra.mxu0 %v4760_v33  ;;  %3223 = vmatpush1.bf16.msra.mxu1 %v4761_v41  ;;  %v4790_v33 = vld [vmem:[#allocation35_spill] sm:$0xff]  ;;  %v4791_v41 = vld [vmem:[#allocation24_spill] sm:$0xff] }
 0x234   : > { %v3400_v10 = vpop.eup %3399  ;;  %v1527_v21 = vsub.f32 %v4762_v23, %v3398_v18  ;;  %3193 = vmatprep.subr.bf16.mxu0 %v4763_v47  ;;  %3225 = vmatprep.subr.bf16.mxu1 %v4764_v28  ;;  %v4794_v23 = vld [vmem:[#allocation38_spill] sm:$0xff]  ;;  %v4796_v47 = vld [vmem:[#allocation40_spill] sm:$0xff]  ;;  %v4797_v28 = vld [vmem:[#allocation41_spill] sm:$0xff] }
 0x235   : > { %v3402_v46 = vpop.eup %3401  ;;  %v1517_v3 = vmul.f32 %v3400_v10, %v862_v61  ;;  %1608 = vmatprep.mubr.f32.mxu0 %v4737_v58  ;;  %1697 = vmatprep.mubr.f32.mxu1 %v4737_v58  ;;  %v4789_v61 = vld [vmem:[#allocation23_spill] sm:$0xff]  ;;  %v4793_v10 = vld [vmem:[#allocation36_spill] sm:$0xff] }
 0x236   : > { %v1531_v17 = vmul.f32 %v3402_v46, %v1527_v21  ;;  %v4795_v21 = vld [vmem:[#allocation39_spill] sm:$0xff]  ;;  %v4798_v46 = vld [vmem:[#allocation42_spill] sm:$0xff] }
 0x237   : > { %v1521_v27 = vadd.f32 %v1517_v3, %v1455_v29  ;;  %3195 = vmatpush1.bf16.msra.mxu0 %v4765_v35  ;;  %3227 = vmatpush1.bf16.msra.mxu1 %v4766_v22  ;;  %v4792_v29 = vld [vmem:[#allocation37_spill] sm:$0xff]  ;;  %v4799_v3 = vld [vmem:[#allocation43_spill] sm:$0xff]  ;;  %v4801_v35 = vld [vmem:[#allocation48_spill] sm:$0xff] }
 0x238   : > { %v4450_v11 = vadd.f32 %v3398_v18, %v1531_v17  ;;  %3197 = vmatprep.subr.bf16.mxu0 %v4767_v39  ;;  %3229 = vmatprep.subr.bf16.mxu1 %v4768_v40  ;;  %v4788_v18 = vld [vmem:[#allocation34_spill] sm:$0xff]  ;;  %v4800_v17 = vld [vmem:[#allocation44_spill] sm:$0xff] }
 0x239   : > { %3407 = vtanh.f32 %v1521_v27 }
 0x23a   : > { %1609 = vmatmul.mubr.f32.gmra.mrb[24].mxu0 %v4450_v11  ;;  %1698 = vmatmul.mubr.f32.gmra.mrb[24].mxu1 %v4450_v11  ;;  %3409 = vrcp.f32 %v1505_v8 }
 0x23b   : > { %v3404_v44 = vpop.eup %3403  ;;  %3199 = vmatpush1.bf16.msra.mxu0 %v4769_v52  ;;  %3231 = vmatpush1.bf16.msra.mxu1 %v4770_v53 }
 0x23c   : > { %v1528_v31 = vsub.f32 %v4771_v26, %v3404_v44  ;;  %3201 = vmatprep.subr.bf16.mxu0 %v4772_v57  ;;  %3233 = vmatprep.subr.bf16.mxu1 %v4773_v13  ;;  %v3406_v63 = vpop.eup %3405 }
 0x23d   : > { %1614 = vmatprep.mubr.f32.mxu0 %v4737_v58  ;;  %1703 = vmatprep.mubr.f32.mxu1 %v4737_v58 }
 0x23e   : > { %v1532_v0 = vmul.f32 %v3406_v63, %v1528_v31 }
 0x23f   : > { %3203 = vmatpush1.bf16.msra.mxu0 %v4774_v1  ;;  %3235 = vmatpush1.bf16.msra.mxu1 %v4775_v6 }
 0x240   : > { %v4465_v16 = vadd.f32 %v3404_v44, %v1532_v0  ;;  %3205 = vmatprep.subr.bf16.mxu0 %v4776_v19  ;;  %3237 = vmatprep.subr.bf16.mxu1 %v4777_v25  ;;  %v4802_v44 = vld [vmem:[#allocation49_spill] sm:$0xff] }
 0x242   : > { %1615 = vmatmul.mubr.f32.gmra.mrb[26].mxu0 %v4465_v16  ;;  %1704 = vmatmul.mubr.f32.gmra.mrb[26].mxu1 %v4465_v16 }
 0x243   : > { %v3408_v34 = vpop.eup %3407  ;;  %3207 = vmatpush1.bf16.msra.mxu0 %v4778_v36  ;;  %3239 = vmatpush1.bf16.msra.mxu1 %v4779_v37 }
 0x244   : > { %v1529_v48 = vsub.f32 %v4780_v43, %v3408_v34  ;;  %3209 = vmatprep.subr.bf16.mxu0 %v4781_v50  ;;  %3241 = vmatprep.subr.bf16.mxu1 %v4782_v9  ;;  %v3410_v4 = vpop.eup %3409 }
 0x245   : > { %1620 = vmatprep.mubr.f32.mxu0 %v4737_v58  ;;  %1709 = vmatprep.mubr.f32.mxu1 %v4737_v58 }
 0x246   : > { %v1533_v38 = vmul.f32 %v3410_v4, %v1529_v48 }
 0x247   : > { %3211 = vmatpush1.bf16.msra.mxu0 %v4783_v49  ;;  %3243 = vmatpush1.bf16.msra.mxu1 %v4784_v54 }
 0x248   : > { %v4480_v56 = vadd.f32 %v3408_v34, %v1533_v38  ;;  %3213 = vmatprep.subr.bf16.mxu0 %v4785_v45  ;;  %3245 = vmatprep.subr.bf16.mxu1 %v4786_v24 }
 0x24a   : > { %1621 = vmatmul.mubr.f32.gmra.mrb[28].mxu0 %v4480_v56  ;;  %1710 = vmatmul.mubr.f32.gmra.mrb[28].mxu1 %v4480_v56 }
 0x24b   : > { %3215 = vmatpush1.bf16.msra.mxu0 %v4787_v5  ;;  %3247 = vmatpush1.bf16.msra.mxu1 %v4788_v18 }
 0x24c   : > { %3217 = vmatprep.subr.bf16.mxu0 %v4789_v61  ;;  %3249 = vmatprep.subr.bf16.mxu1 %v4790_v33 }
 0x24d   : > { %1780 = vmatprep.mubr.f32.mxu0 %v4737_v58  ;;  %1869 = vmatprep.mubr.f32.mxu1 %v4737_v58 }
 0x24f   : > { %3219 = vmatpush1.bf16.msra.mxu0 %v4791_v41  ;;  %3251 = vmatpush1.bf16.msra.mxu1 %v4792_v29 }
 0x250   : > { %3253 = vmatprep.subr.bf16.mxu0 %v4793_v10 }
 0x252   : > { %1781 = vmatmul.mubr.f32.vlgmr.msra.gmra.mrb[30].mxu0 %v4433_v55  ;;  %1870 = vmatmul.mubr.f32.vlgmr.msra.gmra.mrb[30].mxu1 %v4433_v55 }
 0x253   : > { %3255 = vmatpush3.bf16.msra.mxu0 %v4793_v10  ;;  %1786 = vmatprep.mubr.f32.mxu0 %v4737_v58 }
 0x254   : > { %1875 = vmatprep.mubr.f32.mxu1 %v4737_v58  ;;  %3257 = vmatprep.subr.bf16.mxu0 %v4794_v23 }
 0x256   : > { %1787 = vmatmul.mubr.f32.gmra.mrb[32].mxu0 %v4450_v11  ;;  %1876 = vmatmul.mubr.f32.gmra.mrb[32].mxu1 %v4450_v11 }
 0x257   : > { %3259 = vmatpush3.bf16.msra.mxu0 %v4794_v23  ;;  %1792 = vmatprep.mubr.f32.mxu0 %v4737_v58 }
 0x258   : > { %1881 = vmatprep.mubr.f32.mxu1 %v4737_v58  ;;  %3261 = vmatprep.subr.bf16.mxu0 %v4795_v21 }
 0x25a   : > { %1793 = vmatmul.mubr.f32.gmra.mrb[34].mxu0 %v4465_v16  ;;  %1882 = vmatmul.mubr.f32.gmra.mrb[34].mxu1 %v4465_v16 }
 0x25b   : > { %3263 = vmatpush3.bf16.msra.mxu0 %v4795_v21  ;;  %1798 = vmatprep.mubr.f32.mxu0 %v4737_v58 }
 0x25c   : > { %1887 = vmatprep.mubr.f32.mxu1 %v4737_v58  ;;  %3265 = vmatprep.subr.bf16.mxu0 %v4796_v47 }
 0x25e   : > { %1799 = vmatmul.mubr.f32.gmra.mrb[36].mxu0 %v4480_v56  ;;  %1888 = vmatmul.mubr.f32.gmra.mrb[36].mxu1 %v4480_v56 }
 0x25f   : > { %3267 = vmatpush3.bf16.msra.mxu0 %v4796_v47  ;;  %2902 = vmatprep.mubr.f32.mxu0 %v4433_v55 }
 0x260   : > { %3269 = vmatprep.subr.bf16.mxu0 %v4797_v28  ;;  %2043 = vmatprep.mubr.f32.mxu1 %v4737_v58 }
 0x263   : > { %3271 = vmatpush3.bf16.msra.mxu0 %v4797_v28 }
 0x264   : > { %3273 = vmatprep.subr.bf16.mxu0 %v4798_v46 }
 0x267   : > { %3275 = vmatpush3.bf16.msra.mxu0 %v4798_v46 }
 0x268   : > { %3277 = vmatprep.subr.bf16.mxu0 %v4799_v3 }
 0x26b   : > { %3279 = vmatpush3.bf16.msra.mxu0 %v4799_v3 }
 0x26c   : > { %3281 = vmatprep.subr.bf16.mxu0 %v4800_v17 }
 0x26f   : > { %3283 = vmatpush3.bf16.msra.mxu0 %v4800_v17 }
 0x270   : > { %3309 = vmatprep.subr.bf16.mxu0 %v4750_v14 }
 0x272   : > { %2903 = vmatmul.mubr.f32.vlgmr.msra.gmra.mrb[38].mxu0 %v4450_v11 }
 0x273   : > { %2905 = vmatprep.mubr.f32.mxu0 %v4465_v16 }
 0x276   : > { %2906 = vmatmul.mubr.f32.gmra.mrb[40].mxu0 %v4480_v56 }
 0x277   : > { %2933 = vmatprep.mubr.msk.f32.mxu0 %vm3461_vm0, %v4737_v58 }
 0x305   : > { %v1604_v8 = vpop.f32.mrb[22].mxu0  ;;  %v1693_v27 = vpop.f32.mrb[22].mxu1 }
 0x306   : > { %v1605_v22 = vadd.f32 %v1604_v8, %v4801_v35  ;;  %v1606_v39 = vpop.f32.mrb[23].mxu0  ;;  %v1695_v40 = vpop.f32.mrb[23].mxu1  ;;  %v1694_v61 = vadd.f32 %v1693_v27, %v4270_v15 }
 0x307   : > { %v1696_v52 = vadd.f32 %v1695_v40, %v4802_v44  ;;  %v1607_v24 = vadd.f32 %v1606_v39, %v4275_v2 }
 0x309   : > { %v3286_v53 = vpack.c.bf16 %v1696_v52, %v1605_v22 }
 0x30d   : > { %v1610_v26 = vpop.f32.mrb[24].mxu0  ;;  %v1699_v31 = vpop.f32.mrb[24].mxu1 }
 0x30e   : > { %v1611_v57 = vadd.f32 %v1610_v26, %v4801_v35  ;;  %v1612_v13 = vpop.f32.mrb[25].mxu0  ;;  %v1701_v63 = vpop.f32.mrb[25].mxu1  ;;  %v1700_v28 = vadd.f32 %v1699_v31, %v4270_v15 }
 0x30f   : > { %v1702_v0 = vadd.f32 %v1701_v63, %v4802_v44  ;;  %v1613_v23 = vadd.f32 %v1612_v13, %v4275_v2 }
 0x311   : > { %v3293_v1 = vpack.c.bf16 %v1702_v0, %v1611_v57 }
 0x315   : > { %v1616_v6 = vpop.f32.mrb[26].mxu0  ;;  %v1705_v19 = vpop.f32.mrb[26].mxu1 }
 0x316   : > { %v1617_v25 = vadd.f32 %v1616_v6, %v4801_v35  ;;  %v1618_v34 = vpop.f32.mrb[27].mxu0  ;;  %v1707_v36 = vpop.f32.mrb[27].mxu1  ;;  %v1706_v39 = vadd.f32 %v1705_v19, %v4270_v15 }
 0x317   : > { %v1708_v37 = vadd.f32 %v1707_v36, %v4802_v44  ;;  %v1619_v27 = vadd.f32 %v1618_v34, %v4275_v2 }
 0x319   : > { %v3300_v43 = vpack.c.bf16 %v1708_v37, %v1617_v25 }
 0x31d   : > { %v1622_v48 = vpop.f32.mrb[28].mxu0  ;;  %v1711_v50 = vpop.f32.mrb[28].mxu1 }
 0x31e   : > { %v4539_v9 = vadd.f32 %v1622_v48, %v4801_v35  ;;  %v1624_v4 = vpop.f32.mrb[29].mxu0  ;;  %v1713_v38 = vpop.f32.mrb[29].mxu1  ;;  %v1712_v13 = vadd.f32 %v1711_v50, %v4270_v15 }
 0x31f   : > { %v1714_v49 = vadd.f32 %v1713_v38, %v4802_v44  ;;  %v1625_v26 = vadd.f32 %v1624_v4, %v4275_v2 }
 0x321   : > { %v3307_v54 = vpack.c.bf16 %v1714_v49, %v4539_v9 }
 0x325   : > { %v1782_v45 = vpop.f32.mrb[30].mxu0 }
 0x326   : > { %v1783_v5 = vadd.f32 %v1782_v45, %v4278_v62  ;;  %v1784_v18 = vpop.f32.mrb[31].mxu0 }
 0x327   : > { %v1785_v33 = vadd.f32 %v1784_v18, %v4281_v42 }
 0x328   : > { %v3284_v41 = vpack.c.bf16 %v1783_v5, %v1607_v24 }
 0x329   : > { %v3289_v29 = vpack.c.bf16 %v1785_v33, %v1694_v61  ;;  %v1788_v10 = vpop.f32.mrb[32].mxu0 }
 0x32a   : > { %v1789_v21 = vadd.f32 %v1788_v10, %v4278_v62  ;;  %v1790_v47 = vpop.f32.mrb[33].mxu0  ;;  %3285 = vmatprep.subr.bf16.mxu1 %v3284_v41 }
 0x32b   : > { %v1791_v46 = vadd.f32 %v1790_v47, %v4281_v42  ;;  %3287 = vmatpush1.bf16.msra.mxu1 %v3286_v53 }
 0x32c   : > { %v3291_v3 = vpack.c.bf16 %v1789_v21, %v1613_v23  ;;  %3288 = vmatprep.subr.bf16.mxu1 %v4750_v14 }
 0x32d   : > { %v3296_v17 = vpack.c.bf16 %v1791_v46, %v1700_v28  ;;  %v1794_v8 = vpop.f32.mrb[34].mxu0 }
 0x32e   : > { %v1795_v35 = vadd.f32 %v1794_v8, %v4278_v62  ;;  %v1796_v22 = vpop.f32.mrb[35].mxu0  ;;  %2722 = vmatmul.mubr.msk.f32.vlgmr.msra.gmra.mrb[30].mxu1 %vm881_vm1, %v4298_v59 }
 0x32f   : > { %v1797_v40 = vadd.f32 %v1796_v22, %v4281_v42  ;;  %3290 = vmatpush3.bf16.msra.mxu1 %v3289_v29  ;;  %2912 = vmatprep.mubr.msk.f32.mxu1 %vm3461_vm0, %v4737_v58 }
 0x330   : > { %v3298_v44 = vpack.c.bf16 %v1795_v35, %v1619_v27  ;;  %3292 = vmatprep.subr.bf16.mxu1 %v3291_v3 }
 0x331   : > { %v3303_v52 = vpack.c.bf16 %v1797_v40, %v1706_v39  ;;  %v1800_v53 = vpop.f32.mrb[36].mxu0 }
 0x332   : > { %v1801_v31 = vadd.f32 %v1800_v53, %v4278_v62  ;;  %v1802_v57 = vpop.f32.mrb[37].mxu0  ;;  %2913 = vmatmul.mubr.msk.f32.vlgmr.msra.gmra.mrb[38].mxu1 %vm881_vm1, %v4298_v59 }
 0x333   : > { %v1803_v63 = vadd.f32 %v1802_v57, %v4281_v42  ;;  %3294 = vmatpush1.bf16.msra.mxu1 %v3293_v1  ;;  %2184 = vmatprep.mubr.f32.mxu1 %v4737_v58 }
 0x334   : > { %v3305_v0 = vpack.c.bf16 %v1801_v31, %v1625_v26  ;;  %3295 = vmatprep.subr.bf16.mxu1 %v4750_v14 }
 0x335   : > { %v3310_v6 = vpack.c.bf16 %v1803_v63, %v1712_v13 }
 0x336   : > { %2724 = vmatmul.mubr.msk.f32.vlgmr.msra.gmra.mrb[32].mxu1 %vm881_vm1, %v4316_v30 }
 0x337   : > { %3297 = vmatpush3.bf16.msra.mxu1 %v3296_v17  ;;  %3311 = vmatpush3.bf16.msra.mxu0 %v3310_v6 }
 0x338   : > { %3299 = vmatprep.subr.bf16.mxu1 %v3298_v44  ;;  %2919 = vmatprep.mubr.msk.f32.mxu1 %vm3461_vm0, %v4737_v58 }
 0x33a   : > { %2920 = vmatmul.mubr.msk.f32.vlgmr.msra.gmra.mrb[40].mxu1 %vm881_vm1, %v4316_v30  ;;  %2934 = vmatmul.mubr.msk.f32.vlgmr.msra.gmra.mrb[42].mxu0 %vm881_vm1, %v4335_v60 }
 0x33b   : > { %3301 = vmatpush1.bf16.msra.mxu1 %v3300_v43  ;;  %2325 = vmatprep.mubr.f32.mxu1 %v4737_v58 }
 0x33c   : > { %3302 = vmatprep.subr.bf16.mxu1 %v4750_v14 }
 0x33e   : > { %2726 = vmatmul.mubr.msk.f32.vlgmr.msra.gmra.mrb[34].mxu1 %vm881_vm1, %v4332_v32 }
 0x33f   : > { %3304 = vmatpush3.bf16.msra.mxu1 %v3303_v52  ;;  %2926 = vmatprep.mubr.msk.f32.mxu1 %vm3461_vm0, %v4737_v58 }
 0x340   : > { %3306 = vmatprep.subr.bf16.mxu1 %v3305_v0 }
 0x342   : > { %2927 = vmatmul.mubr.msk.f32.vlgmr.msra.gmra.mrb[42].mxu1 %vm881_vm1, %v4332_v32 }
 0x343   : > { %3308 = vmatpush1.bf16.msra.mxu1 %v3307_v54  ;;  %2466 = vmatprep.mubr.f32.mxu1 %v4737_v58 }
 0x345   : > { %v2904_v42 = vpop.f32.mrb[38].mxu0 }
 0x346   : > { %v1960_v62 = vpop.f32.mrb[39].mxu0  ;;  %2728 = vmatmul.mubr.msk.f32.vlgmr.msra.gmra.mrb[36].mxu1 %vm881_vm1, %v4335_v60  ;;  %v1966_v53 = vadd.f32 %v2904_v42, %v4415_v7 }
 0x347   : > { %v1961_v46 = vadd.f32 %v1960_v62, %v4415_v7 }
 0x349   : > { %v4587_v14 = vpop.f32.mrb[40].mxu0 }
 0x34a   : > { %v4589_v15 = vpop.f32.mrb[41].mxu0 }
 0x401   : > { %v2045_v2 = vpop.f32.mrb[30].mxu1 }
 0x402   : > { %v3329_v59 = vadd.f32 %v4399_v51, %v2045_v2  ;;  %v2047_v30 = vpop.f32.mrb[31].mxu1 }
 0x403   : > { %v3331_v58 = vadd.f32 %v4406_v20, %v2047_v30 }
 0x404   : > { %v2730_v1 = vmul.f32 -1.442695, %v3329_v59  ;;  %v1971_v59 = vadd.f32 %v4589_v15, %v4415_v7 }
 0x405   : > { %v2116_v19 = vpop.f32.mrb[38].mxu1  ;;  %v2734_v48 = vmul.f32 -1.442695, %v3331_v58 }
 0x406   : > { %3411 = vpow2.f32 %v2730_v1  ;;  %v2914_v32 = vpop.f32.mrb[39].mxu1  ;;  %v2117_v27 = vadd.f32 %v2116_v19, %v4420_v12 }
 0x409   : > { %v2186_v25 = vpop.f32.mrb[32].mxu1 }
 0x40a   : > { %v3333_v34 = vadd.f32 %v4399_v51, %v2186_v25  ;;  %v2188_v36 = vpop.f32.mrb[33].mxu1 }
 0x40b   : > { %v3335_v54 = vadd.f32 %v4406_v20, %v2188_v36 }
 0x40c   : > { %v2731_v37 = vmul.f32 -1.442695, %v3333_v34 }
 0x40d   : > { %v2257_v60 = vpop.f32.mrb[40].mxu1  ;;  %v4594_v43 = vpop.f32.mrb[42].mxu0  ;;  %v2735_v61 = vmul.f32 -1.442695, %v3335_v54 }
 0x40e   : > { %3413 = vpow2.f32 %v2731_v37  ;;  %v2921_v50 = vpop.f32.mrb[41].mxu1  ;;  %v2935_v9 = vpop.f32.mrb[43].mxu0  ;;  %v2258_v57 = vadd.f32 %v2257_v60, %v4420_v12  ;;  %v2540_v60 = vadd.f32 %v4594_v43, %v4420_v12 }
 0x40f   : > { %3415 = vpow2.f32 %v2734_v48 }
 0x410   : > { %v3412_v4 = vpop.eup %3411 }
 0x411   : > { %v2559_v38 = vadd.f32 1.0, %v3412_v4  ;;  %v2327_v49 = vpop.f32.mrb[34].mxu1 }
 0x412   : > { %v3337_v45 = vadd.f32 %v4399_v51, %v2327_v49  ;;  %v2329_v24 = vpop.f32.mrb[35].mxu1 }
 0x413   : > { %3417 = vrcp.f32 %v2559_v38  ;;  %v3339_v10 = vadd.f32 %v4406_v20, %v2329_v24 }
 0x414   : > { %v2732_v5 = vmul.f32 -1.442695, %v3337_v45 }
 0x415   : > { %v2398_v18 = vpop.f32.mrb[42].mxu1  ;;  %v2736_v8 = vmul.f32 -1.442695, %v3339_v10 }
 0x416   : > { %3419 = vpow2.f32 %v2732_v5  ;;  %v2928_v33 = vpop.f32.mrb[43].mxu1  ;;  %v2399_v19 = vadd.f32 %v2398_v18, %v4420_v12 }
 0x417   : > { %3421 = vpow2.f32 %v2735_v61 }
 0x418   : > { %v3414_v41 = vpop.eup %3413 }
 0x419   : > { %v2560_v29 = vadd.f32 1.0, %v3414_v41  ;;  %v2468_v23 = vpop.f32.mrb[36].mxu1  ;;  %v3416_v28 = vpop.eup %3415 }
 0x41a   : > { %v3341_v21 = vadd.f32 %v4399_v51, %v2468_v23  ;;  %v2470_v47 = vpop.f32.mrb[37].mxu1  ;;  %v2587_v39 = vadd.f32 1.0, %v3416_v28 }
 0x41b   : > { %3423 = vrcp.f32 %v2560_v29  ;;  %v3343_v52 = vadd.f32 %v4406_v20, %v2470_v47 }
 0x41c   : > { %v2733_v3 = vmul.f32 -1.442695, %v3341_v21 }
 0x41d   : > { %v3418_v17 = vpop.eup %3417  ;;  %v2737_v31 = vmul.f32 -1.442695, %v3343_v52 }
 0x41e   : > { %v2599_v35 = vmul.f32 %v3418_v17, %v1961_v46  ;;  %3425 = vpow2.f32 %v2733_v3 }
 0x41f   : > { %3427 = vpow2.f32 %v2736_v8 }
 0x420   : > { %v3420_v22 = vpop.eup %3419  ;;  %v2603_v40 = vadd.f32 %v2599_v35, %v2117_v27 }
 0x421   : > { %v2561_v44 = vadd.f32 1.0, %v3420_v22  ;;  %v3422_v51 = vpop.eup %3421 }
 0x422   : > { %3429 = vtanh.f32 %v2603_v40  ;;  %v2588_v0 = vadd.f32 1.0, %v3422_v51 }
 0x423   : > { %3431 = vrcp.f32 %v2561_v44 }
 0x424   : > { %3433 = vrcp.f32 %v2587_v39 }
 0x425   : > { %v3424_v26 = vpop.eup %3423  ;;  %3435 = vpow2.f32 %v2737_v31 }
 0x426   : > { %v2600_v13 = vmul.f32 %v3424_v26, %v1966_v53 }
 0x428   : > { %v3426_v63 = vpop.eup %3425  ;;  %v2604_v6 = vadd.f32 %v2600_v13, %v2258_v57 }
 0x429   : > { %v2562_v62 = vadd.f32 1.0, %v3426_v63  ;;  %v3428_v2 = vpop.eup %3427 }
 0x42a   : > { %3437 = vtanh.f32 %v2604_v6  ;;  %v2589_v58 = vadd.f32 1.0, %v3428_v2 }
 0x42b   : > { %3439 = vrcp.f32 %v2562_v62 }
 0x42c   : > { %v3430_v20 = vpop.eup %3429  ;;  %3441 = vrcp.f32 %v2588_v0 }
 0x42d   : > { %v3432_v42 = vpop.eup %3431  ;;  %v2611_v30 = vsub.f32 %v4433_v55, %v3430_v20  ;;  %v1976_v55 = vadd.f32 %v4587_v14, %v4415_v7 }
 0x42e   : > { %v3434_v1 = vpop.eup %3433  ;;  %v2601_v32 = vmul.f32 %v3432_v42, %v1971_v59 }
 0x42f   : > { %v2615_v25 = vmul.f32 %v3434_v1, %v2611_v30  ;;  %v3436_v15 = vpop.eup %3435 }
 0x430   : > { %v2605_v34 = vadd.f32 %v2601_v32, %v2399_v19  ;;  %v2590_v49 = vadd.f32 1.0, %v3436_v15 }
 0x431   : > { %v2619_v36 = vadd.f32 %v3430_v20, %v2615_v25 }
 0x432   : > { %3443 = vtanh.f32 %v2605_v34 }
 0x433   : > { %2623 = vst [vmem:[%s4613_s30] sm:$0xff] %v2619_v36  ;;  %3445 = vrcp.f32 %v2589_v58 }
 0x434   : > { %v3438_v37 = vpop.eup %3437 }
 0x435   : > { %v3440_v48 = vpop.eup %3439  ;;  %v2612_v50 = vsub.f32 %v4450_v11, %v3438_v37 }
 0x436   : > { %v3442_v9 = vpop.eup %3441  ;;  %v2602_v4 = vmul.f32 %v3440_v48, %v1976_v55 }
 0x437   : > { %v2616_v38 = vmul.f32 %v3442_v9, %v2612_v50 }
 0x438   : > { %v2606_v54 = vadd.f32 %v2602_v4, %v2540_v60 }
 0x439   : > { %v2620_v45 = vadd.f32 %v3438_v37, %v2616_v38 }
 0x43a   : > { %3447 = vtanh.f32 %v2606_v54 }
 0x43b   : > { %2624 = vst [vmem:[%s4613_s30 + $0x8] sm:$0xff] %v2620_v45  ;;  %3449 = vrcp.f32 %v2590_v49 }
 0x43c   : > { %v3444_v24 = vpop.eup %3443 }
 0x43d   : > { %v2613_v7 = vsub.f32 %v4465_v16, %v3444_v24  ;;  %v3446_v14 = vpop.eup %3445 }
 0x43f   : > { %v2617_v5 = vmul.f32 %v3446_v14, %v2613_v7 }
 0x441   : > { %v2621_v12 = vadd.f32 %v3444_v24, %v2617_v5 }
 0x443   : > { %2625 = vst [vmem:[%s4613_s30 + $0x10] sm:$0xff] %v2621_v12 }
 0x444   : > { %v3448_v43 = vpop.eup %3447 }
 0x445   : > { %v2614_v11 = vsub.f32 %v4480_v56, %v3448_v43  ;;  %v3450_v18 = vpop.eup %3449 }
 0x447   : > { %v2618_v61 = vmul.f32 %v3450_v18, %v2614_v11 }
 0x449   : > { %v2622_v33 = vadd.f32 %v3448_v43, %v2618_v61 }
 0x44b   : > { %2626 = vst [vmem:[%s4613_s30 + $0x18] sm:$0xff] %v2622_v33 }
 0x44c PF: > { %s14_s15 = sadd.s32 1, %s3457_s15  }
 0x44d   : > { %p11_p4 = scmp.ge.s32.totalorder %s14_s15, 4  }
 0x44f   :  { %13 = sbr.rel (!%p11_p4) target bundleno = 1 (0x1), region = 69 }

</bundles_post_ra>
